<compile_context>
chip_gen: v5e
topology: v5e:2x2
jax: 0.10.0
libtpu: 0.0.40
codegen_flags: <defaults>
</compile_context>

<pallas_src>
import functools

import jax
import jax.numpy as jnp
from jax.experimental import pallas as pl
from jax.experimental.pallas import tpu as pltpu

# ---------------- config (small synthetic sizes consistent with the module) -------------
BATCH = 2
WINDOW = 8            # cfg.window_size
FRAMES = 16           # seq_len, divisible by WINDOW -> 2 windows per batch element
EMOTION_DIM = 8       # cfg.emotion_dim
HIDDEN_DIM = 32       # cfg.hidden_dim == cfg.z_dim == VQ embedding dim
N_EMB = 16            # VQ codebook size (256 in the original, shrunk for the demo)
MLP_DIMS = (32, 32)   # cfg.emb_dims
COEFF_3DMM_DIM = 16   # cfg.coeff_3dmm_dim
VQ_BETA = 0.0         # VectorQuantizer(beta=0)

# lane layout of the packed (W*N, 128) output slab
SLAB_LANES = 128
LOSS_LANE = EMOTION_DIM + COEFF_3DMM_DIM        # 24: emb_loss (frame 0)
PERP_LANE = LOSS_LANE + 1                       # 25: perplexity (frame 0)
ONEHOT_BASE = 32                                # 32..32+K-1: min_encodings (frame 0)
IDX_LANE = ONEHOT_BASE + N_EMB                  # 48: min_encoding_indices as f32 (frame 0)
assert PERP_LANE < ONEHOT_BASE and IDX_LANE < SLAB_LANES


# ---------------------------------- kernel ----------------------------------------------
def _lstm_gates(gates, c, H):
    """PyTorch LSTMCell gate ordering i, f, g, o.

    Full-width sigmoid + full-width tanh (2 EUP pushes) then lane-slice, instead of four
    quarter-width activations; lane extraction rides the idle XLU slot."""
    sg = jax.nn.sigmoid(gates)          # (N, 4H)
    tg = jnp.tanh(gates)                # (N, 4H)
    i = sg[:, 0:H]
    f = sg[:, H:2 * H]
    g = tg[:, 2 * H:3 * H]
    o = sg[:, 3 * H:4 * H]
    c_new = f * c + i * g
    h_new = o * jnp.tanh(c_new)         # 3rd EUP push
    return h_new, c_new


def fused_kernel(x_ref,
                 enc_wih_ref, enc_whh_ref, enc_b_ref,
                 emb_ref, e2_ref,
                 dec_fw_ref, dec_fb_ref,
                 dwhh_stack_ref, b_fold_ref,
                 wm1_ref, bm1_ref, wm2_ref, bm2_ref,
                 cr_w1f_ref, cr_b1f_ref,
                 out_pack_ref, cr2_pack_ref, pack_b_ref,
                 vq_place_ref,
                 slab_ref, *, n, w):
    f32 = jnp.float32
    N, W = n, w
    H = enc_whh_ref.shape[0]
    K = emb_ref.shape[0]
    M1 = wm1_ref.shape[1]
    M2 = wm2_ref.shape[1]
    SLAB = slab_ref.shape[1]

    # ---------------- encoder: x_rnn (LSTM, batch mode), keep last hidden state ----------
    # One batched input-gate matmul for all W steps (x arrives step-major: row = t*N + n).
    gx_all = (jnp.dot(x_ref[...], enc_wih_ref[...], preferred_element_type=f32)
              + enc_b_ref[...])                                   # (W*N, 4H)
    enc_whh = enc_whh_ref[...]
    h = jnp.zeros((N, H), f32)
    c = jnp.zeros((N, H), f32)
    for t in range(W):                                            # window_size small & static
        gx_t = gx_all[t * N:(t + 1) * N, :]                       # static contiguous slice
        if t == 0:
            gates = gx_t                                          # h == 0
        else:
            gates = gx_t + jnp.dot(h, enc_whh, preferred_element_type=f32)
        h, c = _lstm_gates(gates, c, H)
    z = h                                                         # (N, H)

    # ---------------- vector quantizer ---------------------------------------------------
    e = emb_ref[...]                                              # (K, H)
    dims = (((1,), (1,)), ((), ()))                               # contract H axes, no transpose
    ze = jax.lax.dot_general(z, e, dims, preferred_element_type=f32)            # (N, K)
    d = e2_ref[...] - 2.0 * ze            # ||z||^2 dropped: constant per row, argmin-invariant
    iota = jax.lax.broadcasted_iota(jnp.int32, (N, K), 1)
    dmin = jnp.min(d, axis=1, keepdims=True)
    idx = jnp.min(jnp.where(d <= dmin, iota, K), axis=1, keepdims=True)          # first argmin
    onehot = (iota == idx).astype(f32)                                            # (N, K)
    zq = jnp.dot(onehot, e, preferred_element_type=f32)           # (N, H): straight-through fwd
    diff = zq - z
    mse = jnp.mean(jnp.mean(diff * diff, axis=1, keepdims=True), axis=0, keepdims=True)
    emb_loss = (1.0 + VQ_BETA) * mse                              # (1,1) forward value of VQ loss
    e_mean = jnp.mean(onehot, axis=0, keepdims=True)              # (1, K)
    ent = -jnp.sum(e_mean * jnp.log(e_mean + 1e-10), axis=1, keepdims=True)
    perplexity = jnp.exp(ent)                                     # (1, 1)

    # ---------------- decoder: fc_z_dec -> step-mode d_rnn -> d_mlp (d_out deferred) ------
    # TODO(synk): nn.Dropout between fc_z_dec and d_rnn omitted — identity in eval mode
    # (the fc_z_dec/d_rnn weight fold below assumes it is identity).
    # fc_z_dec folded through the d_rnn input gates (wrapper constant): gates_hy is constant
    # across the W decode steps, matching torch's reuse of the same h_y every step.
    gates_hy = jnp.dot(zq, dec_fw_ref[...], preferred_element_type=f32) + dec_fb_ref[...]
    gates_hy_f = gates_hy + b_fold_ref[...]       # + (b_out @ W_ih_e), valid for steps t >= 1
    dwhh_stack = dwhh_stack_ref[...]              # (H+M2, 4H): [W_hh ; W_out @ W_ih_e]
    wm1 = wm1_ref[...]
    wm2 = wm2_ref[...]
    # bias broadcasts hoisted out of the unrolled serial loop
    bm1 = jnp.broadcast_to(bm1_ref[...], (N, M1))
    bm2 = jnp.broadcast_to(bm2_ref[...], (N, M2))

    h = jnp.zeros((N, H), f32)
    c = jnp.zeros((N, H), f32)
    h2 = None
    h2_list = []
    for t in range(W):
        if t == 0:
            gates = gates_hy                      # h == 0 and y_prev is literal zeros (torch)
        else:
            # single recurrent dot on the lane-concatenated [h | h2] against the row-stacked
            # [W_hh ; W_out @ W_ih_e] (one MXU push/pop per serial step instead of two)
            hh2 = jnp.concatenate([h, h2], axis=1)                        # (N, H+M2)
            gates = gates_hy_f + jnp.dot(hh2, dwhh_stack, preferred_element_type=f32)
        h, c = _lstm_gates(gates, c, H)
        h1 = jnp.tanh(jnp.dot(h, wm1, preferred_element_type=f32) + bm1)
        h2 = jnp.tanh(jnp.dot(h1, wm2, preferred_element_type=f32) + bm2)
        h2_list.append(h2)                        # only stash h2; everything else deferred

    # ---------------- batched epilogue: d_out + coeff_reg + slab packing ------------------
    h2_all = jnp.concatenate(h2_list, axis=0)                             # (W*N, M2) step-major
    # coeff_reg hidden on y = d_out(h2): W_out/b_out folded into cr layer 1 (wrapper consts)
    ch_all = jnp.maximum(jnp.dot(h2_all, cr_w1f_ref[...], preferred_element_type=f32)
                         + cr_b1f_ref[...], 0.0)                          # (W*N, CRH)
    # lane-dense packed rows: prediction at [0,E), coeff_3dmm at [E,E+C)
    row_all = (jnp.dot(h2_all, out_pack_ref[...], preferred_element_type=f32)
               + jnp.dot(ch_all, cr2_pack_ref[...], preferred_element_type=f32)
               + pack_b_ref[...])                                          # (W*N, SLAB)

    # frame-0 extra lanes: VQ one-hot encodings + index (as f32) + emb_loss + perplexity
    lane = jax.lax.broadcasted_iota(jnp.int32, (1, SLAB), 1)
    loss_row = jnp.where(lane == LOSS_LANE, emb_loss,
                         jnp.where(lane == PERP_LANE, perplexity, 0.0))    # (1, SLAB)
    extra0 = jnp.dot(onehot, vq_place_ref[...], preferred_element_type=f32) + loss_row  # (N,SLAB)

    slab_ref[...] = row_all                                # single unmasked lane-dense store
    slab_ref[0:N, :] = row_all[0:N, :] + extra0            # small frame-0 overwrite (lane-dense)


# ---------------------------------- wrappers ---------------------------------------------
def _vmem_specs(n):
    return [pl.BlockSpec(memory_space=pltpu.MemorySpace.VMEM) for _ in range(n)]


def init_params(key):
    ks = jax.random.split(key, 20)
    H, E = HIDDEN_DIM, EMOTION_DIM

    def w(k, shape, scale=0.1):
        return (scale * jax.random.normal(k, shape)).astype(jnp.float32)

    p = {}
    # x_rnn (encoder LSTMCell) — biases folded (b_ih + b_hh), weights pre-transposed
    p['enc_wih'] = w(ks[0], (E, 4 * H))
    p['enc_whh'] = w(ks[1], (H, 4 * H))
    p['enc_b'] = w(ks[2], (1, 4 * H))
    # VQ codebook, uniform(-1/n_e, 1/n_e) like the module init; e_dim == HIDDEN_DIM
    p['codebook'] = jax.random.uniform(ks[3], (N_EMB, H), jnp.float32,
                                       -1.0 / N_EMB, 1.0 / N_EMB)
    # fc_z_dec
    p['dec_w'] = w(ks[4], (H, H))
    p['dec_b'] = w(ks[5], (1, H))
    # d_rnn LSTMCell; input = cat([h_y (H), y_prev (E)]) -> W_ih split by rows
    p['drnn_wih_h'] = w(ks[6], (H, 4 * H))
    p['drnn_wih_e'] = w(ks[7], (E, 4 * H))
    p['drnn_whh'] = w(ks[8], (H, 4 * H))
    p['drnn_b'] = w(ks[9], (1, 4 * H))
    # d_mlp (tanh) + d_out
    p['mlp_w1'] = w(ks[10], (H, MLP_DIMS[0]))
    p['mlp_b1'] = w(ks[11], (1, MLP_DIMS[0]))
    p['mlp_w2'] = w(ks[12], (MLP_DIMS[0], MLP_DIMS[1]))
    p['mlp_b2'] = w(ks[13], (1, MLP_DIMS[1]))
    p['out_w'] = w(ks[14], (MLP_DIMS[1], E))
    p['out_b'] = w(ks[15], (1, E))
    # coeff_reg
    p['cr_w1'] = w(ks[16], (E, H))
    p['cr_b1'] = w(ks[17], (1, H))
    p['cr_w2'] = w(ks[18], (H, COEFF_3DMM_DIM))
    p['cr_b2'] = w(ks[19], (1, COEFF_3DMM_DIM))
    return p


def forward(params, listener_emotion, listener_3dmm):
    B, F, E = listener_emotion.shape
    W = WINDOW
    C = COEFF_3DMM_DIM
    K = N_EMB
    N = B * (F // W)
    assert F % W == 0

    # (B, F, E) -> (N, W, E) -> 's b f' -> flat (W*N, E): same grouping/order as the torch
    # reshape + rearrange.  Layout plumbing on a few-KB array so the kernel's per-step
    # slices are contiguous sublane blocks and the encoder input matmul is one push.
    x2d = (listener_emotion.reshape(N, W, E)
           .transpose(1, 0, 2)
           .reshape(W * N, E)
           .astype(jnp.float32))

    # ---- parameter-only folds: jit constants, computed once outside the kernel ----------
    w_fold = params['out_w'] @ params['drnn_wih_e']                      # (M2, 4H)
    b_fold = params['out_b'] @ params['drnn_wih_e']                      # (1, 4H)
    dwhh_stack = jnp.concatenate([params['drnn_whh'], w_fold], axis=0)   # (H+M2, 4H)
    dec_fw = params['dec_w'] @ params['drnn_wih_h']                      # fc_z_dec -> d_rnn gates
    dec_fb = params['dec_b'] @ params['drnn_wih_h'] + params['drnn_b']   # (1, 4H)
    e2 = jnp.sum(params['codebook'] * params['codebook'], axis=1)[None, :]  # (1, K)
    cr_w1f = params['out_w'] @ params['cr_w1']                           # d_out folded into cr1
    cr_b1f = params['out_b'] @ params['cr_w1'] + params['cr_b1']         # (1, CRH)
    # lane-dense packed output weights: d_out at lanes [0,E), coeff_reg layer-2 at [E,E+C)
    out_pack = jnp.zeros((MLP_DIMS[1], SLAB_LANES), jnp.float32).at[:, 0:E].set(params['out_w'])
    cr2_pack = jnp.zeros((HIDDEN_DIM, SLAB_LANES), jnp.float32).at[:, E:E + C].set(params['cr_w2'])
    pack_b = (jnp.zeros((1, SLAB_LANES), jnp.float32)
              .at[:, 0:E].set(params['out_b'])
              .at[:, E:E + C].set(params['cr_b2']))
    # VQ placement matrix: one matmul puts the one-hot row at lanes [ONEHOT_BASE, +K) and its
    # index (sum_k onehot*k) at IDX_LANE.
    vq_place = (jnp.zeros((K, SLAB_LANES), jnp.float32)
                .at[jnp.arange(K), ONEHOT_BASE + jnp.arange(K)].set(1.0)
                .at[:, IDX_LANE].set(jnp.arange(K, dtype=jnp.float32)))

    kernel = functools.partial(fused_kernel, n=N, w=W)
    slab = pl.pallas_call(
        kernel,
        out_shape=jax.ShapeDtypeStruct((W * N, SLAB_LANES), jnp.float32),
        in_specs=_vmem_specs(20),
        out_specs=pl.BlockSpec(memory_space=pltpu.MemorySpace.VMEM),
    )(x2d,
      params['enc_wih'], params['enc_whh'], params['enc_b'],
      params['codebook'], e2,
      dec_fw, dec_fb,
      dwhh_stack, b_fold,
      params['mlp_w1'], params['mlp_b1'], params['mlp_w2'], params['mlp_b2'],
      cr_w1f, cr_b1f,
      out_pack, cr2_pack, pack_b,
      vq_place)

    # unpack the lane-dense slab (wrapper-side layout plumbing on a few-KB array)
    slab3 = slab.reshape(W, N, SLAB_LANES)                 # 's b lanes'
    Y_r = slab3[:, :, 0:E].transpose(1, 0, 2).reshape(B, F, E)         # 's b f -> b s f'
    coeff = slab3[:, :, E:E + C].transpose(1, 0, 2).reshape(B, F, C)
    emb_loss = slab[0, LOSS_LANE]
    perplexity = slab[0, PERP_LANE]
    min_encodings = slab[0:N, ONEHOT_BASE:ONEHOT_BASE + K]             # (N, K) float 0/1
    min_idx = slab[0:N, IDX_LANE].astype(jnp.int32).reshape(N, 1)      # exact small ints

    return {
        'prediction': Y_r,
        'target': listener_emotion,
        'coefficients_3dmm': coeff,
        'target_coefficients': listener_3dmm,
        'emb_loss': emb_loss,
        'info': (perplexity, min_encodings, min_idx),
    }


if __name__ == "__main__":
    key = jax.random.PRNGKey(0)
    pkey, dkey1, dkey2 = jax.random.split(key, 3)
    params = init_params(pkey)
    listener_emotion = jax.random.normal(dkey1, (BATCH, FRAMES, EMOTION_DIM), jnp.float32)
    listener_3dmm = jax.random.normal(dkey2, (BATCH, FRAMES, COEFF_3DMM_DIM), jnp.float32)

    fwd = jax.jit(functools.partial(forward, params))
    out = fwd(listener_emotion, listener_3dmm)
    jax.block_until_ready(out)
    print("KERNEL_OK")
</pallas_src>

<mosaic_0001>
module attributes {stable_mosaic.version = 11 : i64} {
  func.func @fused_kernel(%arg0: memref<32x8xf32, #tpu.memory_space<vmem>>, %arg1: memref<8x128xf32, #tpu.memory_space<vmem>>, %arg2: memref<32x128xf32, #tpu.memory_space<vmem>>, %arg3: memref<1x128xf32, #tpu.memory_space<vmem>>, %arg4: memref<16x32xf32, #tpu.memory_space<vmem>>, %arg5: memref<1x16xf32, #tpu.memory_space<vmem>>, %arg6: memref<32x128xf32, #tpu.memory_space<vmem>>, %arg7: memref<1x128xf32, #tpu.memory_space<vmem>>, %arg8: memref<64x128xf32, #tpu.memory_space<vmem>>, %arg9: memref<1x128xf32, #tpu.memory_space<vmem>>, %arg10: memref<32x32xf32, #tpu.memory_space<vmem>>, %arg11: memref<1x32xf32, #tpu.memory_space<vmem>>, %arg12: memref<32x32xf32, #tpu.memory_space<vmem>>, %arg13: memref<1x32xf32, #tpu.memory_space<vmem>>, %arg14: memref<32x32xf32, #tpu.memory_space<vmem>>, %arg15: memref<1x32xf32, #tpu.memory_space<vmem>>, %arg16: memref<32x128xf32, #tpu.memory_space<vmem>>, %arg17: memref<32x128xf32, #tpu.memory_space<vmem>>, %arg18: memref<1x128xf32, #tpu.memory_space<vmem>>, %arg19: memref<16x128xf32, #tpu.memory_space<vmem>>, %arg20: memref<32x128xf32, #tpu.memory_space<vmem>>) attributes {dimension_semantics = [], scalar_prefetch = 0 : i64, scratch_operands = 0 : i64, tpu.core_type = #tpu.core_type<tc>} {
    %c0 = arith.constant 0 : index
    %c0_0 = arith.constant 0 : index
    %0 = vector.load %arg0[%c0, %c0_0] : memref<32x8xf32, #tpu.memory_space<vmem>>, vector<32x8xf32>
    %c0_1 = arith.constant 0 : index
    %c0_2 = arith.constant 0 : index
    %1 = vector.load %arg1[%c0_1, %c0_2] : memref<8x128xf32, #tpu.memory_space<vmem>>, vector<8x128xf32>
    %cst = arith.constant dense<0.000000e+00> : vector<32x128xf32>
    %2 = tpu.matmul %0, %1, %cst {dimension_numbers = #tpu.dot_dimension_numbers<[1], [0], [0], [1], [0, 0, 1, 1], [], []>} : vector<32x8xf32>, vector<8x128xf32>, vector<32x128xf32> -> vector<32x128xf32>
    %c0_3 = arith.constant 0 : index
    %c0_4 = arith.constant 0 : index
    %3 = vector.load %arg3[%c0_3, %c0_4] : memref<1x128xf32, #tpu.memory_space<vmem>>, vector<1x128xf32>
    %4 = vector.broadcast %3 : vector<1x128xf32> to vector<32x128xf32>
    %5 = arith.addf %2, %4 : vector<32x128xf32>
    %c0_5 = arith.constant 0 : index
    %c0_6 = arith.constant 0 : index
    %6 = vector.load %arg2[%c0_5, %c0_6] : memref<32x128xf32, #tpu.memory_space<vmem>>, vector<32x128xf32>
    %cst_7 = arith.constant 0.000000e+00 : f32
    %7 = vector.broadcast %cst_7 : f32 to vector<4x32xf32>
    %8 = vector.extract_strided_slice %5 {offsets = [0, 0], sizes = [4, 128], strides = [1, 1]} : vector<32x128xf32> to vector<4x128xf32>
    %9 = arith.negf %8 : vector<4x128xf32>
    %10 = math.exp %9 : vector<4x128xf32>
    %cst_8 = arith.constant 1.000000e+00 : f32
    %11 = vector.broadcast %cst_8 : f32 to vector<4x128xf32>
    %12 = arith.addf %11, %10 : vector<4x128xf32>
    %13 = arith.divf %11, %12 : vector<4x128xf32>
    %14 = math.tanh %8 : vector<4x128xf32>
    %15 = vector.extract_strided_slice %13 {offsets = [0, 0], sizes = [4, 32], strides = [1, 1]} : vector<4x128xf32> to vector<4x32xf32>
    %16 = vector.extract_strided_slice %13 {offsets = [0, 32], sizes = [4, 32], strides = [1, 1]} : vector<4x128xf32> to vector<4x32xf32>
    %17 = vector.extract_strided_slice %14 {offsets = [0, 64], sizes = [4, 32], strides = [1, 1]} : vector<4x128xf32> to vector<4x32xf32>
    %18 = vector.extract_strided_slice %13 {offsets = [0, 96], sizes = [4, 32], strides = [1, 1]} : vector<4x128xf32> to vector<4x32xf32>
    %19 = arith.mulf %16, %7 : vector<4x32xf32>
    %20 = arith.mulf %15, %17 : vector<4x32xf32>
    %21 = arith.addf %19, %20 : vector<4x32xf32>
    %22 = math.tanh %21 : vector<4x32xf32>
    %23 = arith.mulf %18, %22 : vector<4x32xf32>
    %24 = vector.extract_strided_slice %5 {offsets = [4, 0], sizes = [4, 128], strides = [1, 1]} : vector<32x128xf32> to vector<4x128xf32>
    %cst_9 = arith.constant dense<0.000000e+00> : vector<4x128xf32>
    %25 = tpu.matmul %23, %6, %cst_9 {dimension_numbers = #tpu.dot_dimension_numbers<[1], [0], [0], [1], [0, 0, 1, 1], [], []>} : vector<4x32xf32>, vector<32x128xf32>, vector<4x128xf32> -> vector<4x128xf32>
    %26 = arith.addf %24, %25 : vector<4x128xf32>
    %27 = arith.negf %26 : vector<4x128xf32>
    %28 = math.exp %27 : vector<4x128xf32>
    %cst_10 = arith.constant 1.000000e+00 : f32
    %29 = vector.broadcast %cst_10 : f32 to vector<4x128xf32>
    %30 = arith.addf %29, %28 : vector<4x128xf32>
    %31 = arith.divf %29, %30 : vector<4x128xf32>
    %32 = math.tanh %26 : vector<4x128xf32>
    %33 = vector.extract_strided_slice %31 {offsets = [0, 0], sizes = [4, 32], strides = [1, 1]} : vector<4x128xf32> to vector<4x32xf32>
    %34 = vector.extract_strided_slice %31 {offsets = [0, 32], sizes = [4, 32], strides = [1, 1]} : vector<4x128xf32> to vector<4x32xf32>
    %35 = vector.extract_strided_slice %32 {offsets = [0, 64], sizes = [4, 32], strides = [1, 1]} : vector<4x128xf32> to vector<4x32xf32>
    %36 = vector.extract_strided_slice %31 {offsets = [0, 96], sizes = [4, 32], strides = [1, 1]} : vector<4x128xf32> to vector<4x32xf32>
    %37 = arith.mulf %34, %21 : vector<4x32xf32>
    %38 = arith.mulf %33, %35 : vector<4x32xf32>
    %39 = arith.addf %37, %38 : vector<4x32xf32>
    %40 = math.tanh %39 : vector<4x32xf32>
    %41 = arith.mulf %36, %40 : vector<4x32xf32>
    %42 = vector.extract_strided_slice %5 {offsets = [8, 0], sizes = [4, 128], strides = [1, 1]} : vector<32x128xf32> to vector<4x128xf32>
    %cst_11 = arith.constant dense<0.000000e+00> : vector<4x128xf32>
    %43 = tpu.matmul %41, %6, %cst_11 {dimension_numbers = #tpu.dot_dimension_numbers<[1], [0], [0], [1], [0, 0, 1, 1], [], []>} : vector<4x32xf32>, vector<32x128xf32>, vector<4x128xf32> -> vector<4x128xf32>
    %44 = arith.addf %42, %43 : vector<4x128xf32>
    %45 = arith.negf %44 : vector<4x128xf32>
    %46 = math.exp %45 : vector<4x128xf32>
    %cst_12 = arith.constant 1.000000e+00 : f32
    %47 = vector.broadcast %cst_12 : f32 to vector<4x128xf32>
    %48 = arith.addf %47, %46 : vector<4x128xf32>
    %49 = arith.divf %47, %48 : vector<4x128xf32>
    %50 = math.tanh %44 : vector<4x128xf32>
    %51 = vector.extract_strided_slice %49 {offsets = [0, 0], sizes = [4, 32], strides = [1, 1]} : vector<4x128xf32> to vector<4x32xf32>
    %52 = vector.extract_strided_slice %49 {offsets = [0, 32], sizes = [4, 32], strides = [1, 1]} : vector<4x128xf32> to vector<4x32xf32>
    %53 = vector.extract_strided_slice %50 {offsets = [0, 64], sizes = [4, 32], strides = [1, 1]} : vector<4x128xf32> to vector<4x32xf32>
    %54 = vector.extract_strided_slice %49 {offsets = [0, 96], sizes = [4, 32], strides = [1, 1]} : vector<4x128xf32> to vector<4x32xf32>
    %55 = arith.mulf %52, %39 : vector<4x32xf32>
    %56 = arith.mulf %51, %53 : vector<4x32xf32>
    %57 = arith.addf %55, %56 : vector<4x32xf32>
    %58 = math.tanh %57 : vector<4x32xf32>
    %59 = arith.mulf %54, %58 : vector<4x32xf32>
    %60 = vector.extract_strided_slice %5 {offsets = [12, 0], sizes = [4, 128], strides = [1, 1]} : vector<32x128xf32> to vector<4x128xf32>
    %cst_13 = arith.constant dense<0.000000e+00> : vector<4x128xf32>
    %61 = tpu.matmul %59, %6, %cst_13 {dimension_numbers = #tpu.dot_dimension_numbers<[1], [0], [0], [1], [0, 0, 1, 1], [], []>} : vector<4x32xf32>, vector<32x128xf32>, vector<4x128xf32> -> vector<4x128xf32>
    %62 = arith.addf %60, %61 : vector<4x128xf32>
    %63 = arith.negf %62 : vector<4x128xf32>
    %64 = math.exp %63 : vector<4x128xf32>
    %cst_14 = arith.constant 1.000000e+00 : f32
    %65 = vector.broadcast %cst_14 : f32 to vector<4x128xf32>
    %66 = arith.addf %65, %64 : vector<4x128xf32>
    %67 = arith.divf %65, %66 : vector<4x128xf32>
    %68 = math.tanh %62 : vector<4x128xf32>
    %69 = vector.extract_strided_slice %67 {offsets = [0, 0], sizes = [4, 32], strides = [1, 1]} : vector<4x128xf32> to vector<4x32xf32>
    %70 = vector.extract_strided_slice %67 {offsets = [0, 32], sizes = [4, 32], strides = [1, 1]} : vector<4x128xf32> to vector<4x32xf32>
    %71 = vector.extract_strided_slice %68 {offsets = [0, 64], sizes = [4, 32], strides = [1, 1]} : vector<4x128xf32> to vector<4x32xf32>
    %72 = vector.extract_strided_slice %67 {offsets = [0, 96], sizes = [4, 32], strides = [1, 1]} : vector<4x128xf32> to vector<4x32xf32>
    %73 = arith.mulf %70, %57 : vector<4x32xf32>
    %74 = arith.mulf %69, %71 : vector<4x32xf32>
    %75 = arith.addf %73, %74 : vector<4x32xf32>
    %76 = math.tanh %75 : vector<4x32xf32>
    %77 = arith.mulf %72, %76 : vector<4x32xf32>
    %78 = vector.extract_strided_slice %5 {offsets = [16, 0], sizes = [4, 128], strides = [1, 1]} : vector<32x128xf32> to vector<4x128xf32>
    %cst_15 = arith.constant dense<0.000000e+00> : vector<4x128xf32>
    %79 = tpu.matmul %77, %6, %cst_15 {dimension_numbers = #tpu.dot_dimension_numbers<[1], [0], [0], [1], [0, 0, 1, 1], [], []>} : vector<4x32xf32>, vector<32x128xf32>, vector<4x128xf32> -> vector<4x128xf32>
    %80 = arith.addf %78, %79 : vector<4x128xf32>
    %81 = arith.negf %80 : vector<4x128xf32>
    %82 = math.exp %81 : vector<4x128xf32>
    %cst_16 = arith.constant 1.000000e+00 : f32
    %83 = vector.broadcast %cst_16 : f32 to vector<4x128xf32>
    %84 = arith.addf %83, %82 : vector<4x128xf32>
    %85 = arith.divf %83, %84 : vector<4x128xf32>
    %86 = math.tanh %80 : vector<4x128xf32>
    %87 = vector.extract_strided_slice %85 {offsets = [0, 0], sizes = [4, 32], strides = [1, 1]} : vector<4x128xf32> to vector<4x32xf32>
    %88 = vector.extract_strided_slice %85 {offsets = [0, 32], sizes = [4, 32], strides = [1, 1]} : vector<4x128xf32> to vector<4x32xf32>
    %89 = vector.extract_strided_slice %86 {offsets = [0, 64], sizes = [4, 32], strides = [1, 1]} : vector<4x128xf32> to vector<4x32xf32>
    %90 = vector.extract_strided_slice %85 {offsets = [0, 96], sizes = [4, 32], strides = [1, 1]} : vector<4x128xf32> to vector<4x32xf32>
    %91 = arith.mulf %88, %75 : vector<4x32xf32>
    %92 = arith.mulf %87, %89 : vector<4x32xf32>
    %93 = arith.addf %91, %92 : vector<4x32xf32>
    %94 = math.tanh %93 : vector<4x32xf32>
    %95 = arith.mulf %90, %94 : vector<4x32xf32>
    %96 = vector.extract_strided_slice %5 {offsets = [20, 0], sizes = [4, 128], strides = [1, 1]} : vector<32x128xf32> to vector<4x128xf32>
    %cst_17 = arith.constant dense<0.000000e+00> : vector<4x128xf32>
    %97 = tpu.matmul %95, %6, %cst_17 {dimension_numbers = #tpu.dot_dimension_numbers<[1], [0], [0], [1], [0, 0, 1, 1], [], []>} : vector<4x32xf32>, vector<32x128xf32>, vector<4x128xf32> -> vector<4x128xf32>
    %98 = arith.addf %96, %97 : vector<4x128xf32>
    %99 = arith.negf %98 : vector<4x128xf32>
    %100 = math.exp %99 : vector<4x128xf32>
    %cst_18 = arith.constant 1.000000e+00 : f32
    %101 = vector.broadcast %cst_18 : f32 to vector<4x128xf32>
    %102 = arith.addf %101, %100 : vector<4x128xf32>
    %103 = arith.divf %101, %102 : vector<4x128xf32>
    %104 = math.tanh %98 : vector<4x128xf32>
    %105 = vector.extract_strided_slice %103 {offsets = [0, 0], sizes = [4, 32], strides = [1, 1]} : vector<4x128xf32> to vector<4x32xf32>
    %106 = vector.extract_strided_slice %103 {offsets = [0, 32], sizes = [4, 32], strides = [1, 1]} : vector<4x128xf32> to vector<4x32xf32>
    %107 = vector.extract_strided_slice %104 {offsets = [0, 64], sizes = [4, 32], strides = [1, 1]} : vector<4x128xf32> to vector<4x32xf32>
    %108 = vector.extract_strided_slice %103 {offsets = [0, 96], sizes = [4, 32], strides = [1, 1]} : vector<4x128xf32> to vector<4x32xf32>
    %109 = arith.mulf %106, %93 : vector<4x32xf32>
    %110 = arith.mulf %105, %107 : vector<4x32xf32>
    %111 = arith.addf %109, %110 : vector<4x32xf32>
    %112 = math.tanh %111 : vector<4x32xf32>
    %113 = arith.mulf %108, %112 : vector<4x32xf32>
    %114 = vector.extract_strided_slice %5 {offsets = [24, 0], sizes = [4, 128], strides = [1, 1]} : vector<32x128xf32> to vector<4x128xf32>
    %cst_19 = arith.constant dense<0.000000e+00> : vector<4x128xf32>
    %115 = tpu.matmul %113, %6, %cst_19 {dimension_numbers = #tpu.dot_dimension_numbers<[1], [0], [0], [1], [0, 0, 1, 1], [], []>} : vector<4x32xf32>, vector<32x128xf32>, vector<4x128xf32> -> vector<4x128xf32>
    %116 = arith.addf %114, %115 : vector<4x128xf32>
    %117 = arith.negf %116 : vector<4x128xf32>
    %118 = math.exp %117 : vector<4x128xf32>
    %cst_20 = arith.constant 1.000000e+00 : f32
    %119 = vector.broadcast %cst_20 : f32 to vector<4x128xf32>
    %120 = arith.addf %119, %118 : vector<4x128xf32>
    %121 = arith.divf %119, %120 : vector<4x128xf32>
    %122 = math.tanh %116 : vector<4x128xf32>
    %123 = vector.extract_strided_slice %121 {offsets = [0, 0], sizes = [4, 32], strides = [1, 1]} : vector<4x128xf32> to vector<4x32xf32>
    %124 = vector.extract_strided_slice %121 {offsets = [0, 32], sizes = [4, 32], strides = [1, 1]} : vector<4x128xf32> to vector<4x32xf32>
    %125 = vector.extract_strided_slice %122 {offsets = [0, 64], sizes = [4, 32], strides = [1, 1]} : vector<4x128xf32> to vector<4x32xf32>
    %126 = vector.extract_strided_slice %121 {offsets = [0, 96], sizes = [4, 32], strides = [1, 1]} : vector<4x128xf32> to vector<4x32xf32>
    %127 = arith.mulf %124, %111 : vector<4x32xf32>
    %128 = arith.mulf %123, %125 : vector<4x32xf32>
    %129 = arith.addf %127, %128 : vector<4x32xf32>
    %130 = math.tanh %129 : vector<4x32xf32>
    %131 = arith.mulf %126, %130 : vector<4x32xf32>
    %132 = vector.extract_strided_slice %5 {offsets = [28, 0], sizes = [4, 128], strides = [1, 1]} : vector<32x128xf32> to vector<4x128xf32>
    %cst_21 = arith.constant dense<0.000000e+00> : vector<4x128xf32>
    %133 = tpu.matmul %131, %6, %cst_21 {dimension_numbers = #tpu.dot_dimension_numbers<[1], [0], [0], [1], [0, 0, 1, 1], [], []>} : vector<4x32xf32>, vector<32x128xf32>, vector<4x128xf32> -> vector<4x128xf32>
    %134 = arith.addf %132, %133 : vector<4x128xf32>
    %135 = arith.negf %134 : vector<4x128xf32>
    %136 = math.exp %135 : vector<4x128xf32>
    %cst_22 = arith.constant 1.000000e+00 : f32
    %137 = vector.broadcast %cst_22 : f32 to vector<4x128xf32>
    %138 = arith.addf %137, %136 : vector<4x128xf32>
    %139 = arith.divf %137, %138 : vector<4x128xf32>
    %140 = math.tanh %134 : vector<4x128xf32>
    %141 = vector.extract_strided_slice %139 {offsets = [0, 0], sizes = [4, 32], strides = [1, 1]} : vector<4x128xf32> to vector<4x32xf32>
    %142 = vector.extract_strided_slice %139 {offsets = [0, 32], sizes = [4, 32], strides = [1, 1]} : vector<4x128xf32> to vector<4x32xf32>
    %143 = vector.extract_strided_slice %140 {offsets = [0, 64], sizes = [4, 32], strides = [1, 1]} : vector<4x128xf32> to vector<4x32xf32>
    %144 = vector.extract_strided_slice %139 {offsets = [0, 96], sizes = [4, 32], strides = [1, 1]} : vector<4x128xf32> to vector<4x32xf32>
    %145 = arith.mulf %142, %129 : vector<4x32xf32>
    %146 = arith.mulf %141, %143 : vector<4x32xf32>
    %147 = arith.addf %145, %146 : vector<4x32xf32>
    %148 = math.tanh %147 : vector<4x32xf32>
    %149 = arith.mulf %144, %148 : vector<4x32xf32>
    %c0_23 = arith.constant 0 : index
    %c0_24 = arith.constant 0 : index
    %150 = vector.load %arg4[%c0_23, %c0_24] : memref<16x32xf32, #tpu.memory_space<vmem>>, vector<16x32xf32>
    %cst_25 = arith.constant dense<0.000000e+00> : vector<4x16xf32>
    %151 = tpu.matmul %149, %150, %cst_25 {dimension_numbers = #tpu.dot_dimension_numbers<[1], [1], [0], [0], [0, 0, 1, 0], [], []>} : vector<4x32xf32>, vector<16x32xf32>, vector<4x16xf32> -> vector<4x16xf32>
    %c0_26 = arith.constant 0 : index
    %c0_27 = arith.constant 0 : index
    %152 = vector.load %arg5[%c0_26, %c0_27] : memref<1x16xf32, #tpu.memory_space<vmem>>, vector<1x16xf32>
    %cst_28 = arith.constant 2.000000e+00 : f32
    %153 = vector.broadcast %cst_28 : f32 to vector<4x16xf32>
    %154 = arith.mulf %153, %151 : vector<4x16xf32>
    %155 = vector.broadcast %152 : vector<1x16xf32> to vector<4x16xf32>
    %156 = arith.subf %155, %154 : vector<4x16xf32>
    %157 = tpu.iota {dimensions = array<i32: 1>} : vector<4x16xi32>
    %cst_29 = arith.constant dense<0x7F800000> : vector<4xf32>
    %158 = vector.multi_reduction <minimumf>, %156, %cst_29 [1] : vector<4x16xf32> to vector<4xf32>
    %159 = vector.shape_cast %158 : vector<4xf32> to vector<4x1xf32>
    %160 = vector.broadcast %159 : vector<4x1xf32> to vector<4x16xf32>
    %161 = arith.cmpf ole, %156, %160 : vector<4x16xf32>
    %c16_i32 = arith.constant 16 : i32
    %162 = vector.broadcast %c16_i32 : i32 to vector<4x16xi32>
    %163 = arith.select %161, %157, %162 : vector<4x16xi1>, vector<4x16xi32>
    %cst_30 = arith.constant dense<2147483647> : vector<4xi32>
    %164 = vector.multi_reduction <minsi>, %163, %cst_30 [1] : vector<4x16xi32> to vector<4xi32>
    %165 = vector.shape_cast %164 : vector<4xi32> to vector<4x1xi32>
    %166 = vector.broadcast %165 : vector<4x1xi32> to vector<4x16xi32>
    %167 = arith.cmpi eq, %157, %166 : vector<4x16xi32>
    %168 = arith.extui %167 : vector<4x16xi1> to vector<4x16xi32>
    %169 = arith.sitofp %168 : vector<4x16xi32> to vector<4x16xf32>
    %cst_31 = arith.constant dense<0.000000e+00> : vector<4x32xf32>
    %170 = tpu.matmul %169, %150, %cst_31 {dimension_numbers = #tpu.dot_dimension_numbers<[1], [0], [0], [1], [0, 0, 1, 1], [], []>} : vector<4x16xf32>, vector<16x32xf32>, vector<4x32xf32> -> vector<4x32xf32>
    %171 = arith.subf %170, %149 : vector<4x32xf32>
    %172 = arith.mulf %171, %171 : vector<4x32xf32>
    %cst_32 = arith.constant dense<0.000000e+00> : vector<4xf32>
    %173 = vector.multi_reduction <add>, %172, %cst_32 [1] : vector<4x32xf32> to vector<4xf32>
    %174 = vector.shape_cast %173 : vector<4xf32> to vector<4x1xf32>
    %cst_33 = arith.constant 3.200000e+01 : f32
    %175 = vector.broadcast %cst_33 : f32 to vector<4x1xf32>
    %176 = arith.divf %174, %175 : vector<4x1xf32>
    %cst_34 = arith.constant dense<0.000000e+00> : vector<1xf32>
    %177 = vector.multi_reduction <add>, %176, %cst_34 [0] : vector<4x1xf32> to vector<1xf32>
    %178 = vector.shape_cast %177 : vector<1xf32> to vector<1x1xf32>
    %cst_35 = arith.constant 4.000000e+00 : f32
    %179 = vector.broadcast %cst_35 : f32 to vector<1x1xf32>
    %180 = arith.divf %178, %179 : vector<1x1xf32>
    %cst_36 = arith.constant 1.000000e+00 : f32
    %181 = vector.broadcast %cst_36 : f32 to vector<1x1xf32>
    %182 = arith.mulf %181, %180 : vector<1x1xf32>
    %cst_37 = arith.constant dense<0.000000e+00> : vector<16xf32>
    %183 = vector.multi_reduction <add>, %169, %cst_37 [0] : vector<4x16xf32> to vector<16xf32>
    %184 = vector.shape_cast %183 : vector<16xf32> to vector<1x16xf32>
    %cst_38 = arith.constant 4.000000e+00 : f32
    %185 = vector.broadcast %cst_38 : f32 to vector<1x16xf32>
    %186 = arith.divf %184, %185 : vector<1x16xf32>
    %cst_39 = arith.constant 1.000000e-10 : f32
    %187 = vector.broadcast %cst_39 : f32 to vector<1x16xf32>
    %188 = arith.addf %186, %187 : vector<1x16xf32>
    %189 = math.log %188 : vector<1x16xf32>
    %190 = arith.mulf %186, %189 : vector<1x16xf32>
    %cst_40 = arith.constant dense<0.000000e+00> : vector<1xf32>
    %191 = vector.multi_reduction <add>, %190, %cst_40 [1] : vector<1x16xf32> to vector<1xf32>
    %192 = vector.shape_cast %191 : vector<1xf32> to vector<1x1xf32>
    %cst_41 = arith.constant 0.000000e+00 : f32
    %193 = vector.broadcast %cst_41 : f32 to vector<1x1xf32>
    %194 = arith.subf %193, %192 : vector<1x1xf32>
    %195 = math.exp %194 : vector<1x1xf32>
    %c0_42 = arith.constant 0 : index
    %c0_43 = arith.constant 0 : index
    %196 = vector.load %arg6[%c0_42, %c0_43] : memref<32x128xf32, #tpu.memory_space<vmem>>, vector<32x128xf32>
    %cst_44 = arith.constant dense<0.000000e+00> : vector<4x128xf32>
    %197 = tpu.matmul %170, %196, %cst_44 {dimension_numbers = #tpu.dot_dimension_numbers<[1], [0], [0], [1], [0, 0, 1, 1], [], []>} : vector<4x32xf32>, vector<32x128xf32>, vector<4x128xf32> -> vector<4x128xf32>
    %c0_45 = arith.constant 0 : index
    %c0_46 = arith.constant 0 : index
    %198 = vector.load %arg7[%c0_45, %c0_46] : memref<1x128xf32, #tpu.memory_space<vmem>>, vector<1x128xf32>
    %199 = vector.broadcast %198 : vector<1x128xf32> to vector<4x128xf32>
    %200 = arith.addf %197, %199 : vector<4x128xf32>
    %c0_47 = arith.constant 0 : index
    %c0_48 = arith.constant 0 : index
    %201 = vector.load %arg9[%c0_47, %c0_48] : memref<1x128xf32, #tpu.memory_space<vmem>>, vector<1x128xf32>
    %202 = vector.broadcast %201 : vector<1x128xf32> to vector<4x128xf32>
    %203 = arith.addf %200, %202 : vector<4x128xf32>
    %c0_49 = arith.constant 0 : index
    %c0_50 = arith.constant 0 : index
    %204 = vector.load %arg8[%c0_49, %c0_50] : memref<64x128xf32, #tpu.memory_space<vmem>>, vector<64x128xf32>
    %c0_51 = arith.constant 0 : index
    %c0_52 = arith.constant 0 : index
    %205 = vector.load %arg10[%c0_51, %c0_52] : memref<32x32xf32, #tpu.memory_space<vmem>>, vector<32x32xf32>
    %c0_53 = arith.constant 0 : index
    %c0_54 = arith.constant 0 : index
    %206 = vector.load %arg12[%c0_53, %c0_54] : memref<32x32xf32, #tpu.memory_space<vmem>>, vector<32x32xf32>
    %c0_55 = arith.constant 0 : index
    %c0_56 = arith.constant 0 : index
    %207 = vector.load %arg11[%c0_55, %c0_56] : memref<1x32xf32, #tpu.memory_space<vmem>>, vector<1x32xf32>
    %208 = vector.shape_cast %207 : vector<1x32xf32> to vector<1x32xf32>
    %209 = vector.broadcast %208 : vector<1x32xf32> to vector<4x32xf32>
    %c0_57 = arith.constant 0 : index
    %c0_58 = arith.constant 0 : index
    %210 = vector.load %arg13[%c0_57, %c0_58] : memref<1x32xf32, #tpu.memory_space<vmem>>, vector<1x32xf32>
    %211 = vector.shape_cast %210 : vector<1x32xf32> to vector<1x32xf32>
    %212 = vector.broadcast %211 : vector<1x32xf32> to vector<4x32xf32>
    %cst_59 = arith.constant 0.000000e+00 : f32
    %213 = vector.broadcast %cst_59 : f32 to vector<4x32xf32>
    %214 = arith.negf %200 : vector<4x128xf32>
    %215 = math.exp %214 : vector<4x128xf32>
    %cst_60 = arith.constant 1.000000e+00 : f32
    %216 = vector.broadcast %cst_60 : f32 to vector<4x128xf32>
    %217 = arith.addf %216, %215 : vector<4x128xf32>
    %218 = arith.divf %216, %217 : vector<4x128xf32>
    %219 = math.tanh %200 : vector<4x128xf32>
    %220 = vector.extract_strided_slice %218 {offsets = [0, 0], sizes = [4, 32], strides = [1, 1]} : vector<4x128xf32> to vector<4x32xf32>
    %221 = vector.extract_strided_slice %218 {offsets = [0, 32], sizes = [4, 32], strides = [1, 1]} : vector<4x128xf32> to vector<4x32xf32>
    %222 = vector.extract_strided_slice %219 {offsets = [0, 64], sizes = [4, 32], strides = [1, 1]} : vector<4x128xf32> to vector<4x32xf32>
    %223 = vector.extract_strided_slice %218 {offsets = [0, 96], sizes = [4, 32], strides = [1, 1]} : vector<4x128xf32> to vector<4x32xf32>
    %224 = arith.mulf %221, %213 : vector<4x32xf32>
    %225 = arith.mulf %220, %222 : vector<4x32xf32>
    %226 = arith.addf %224, %225 : vector<4x32xf32>
    %227 = math.tanh %226 : vector<4x32xf32>
    %228 = arith.mulf %223, %227 : vector<4x32xf32>
    %cst_61 = arith.constant dense<0.000000e+00> : vector<4x32xf32>
    %229 = tpu.matmul %228, %205, %cst_61 {dimension_numbers = #tpu.dot_dimension_numbers<[1], [0], [0], [1], [0, 0, 1, 1], [], []>} : vector<4x32xf32>, vector<32x32xf32>, vector<4x32xf32> -> vector<4x32xf32>
    %230 = arith.addf %229, %209 : vector<4x32xf32>
    %231 = math.tanh %230 : vector<4x32xf32>
    %cst_62 = arith.constant dense<0.000000e+00> : vector<4x32xf32>
    %232 = tpu.matmul %231, %206, %cst_62 {dimension_numbers = #tpu.dot_dimension_numbers<[1], [0], [0], [1], [0, 0, 1, 1], [], []>} : vector<4x32xf32>, vector<32x32xf32>, vector<4x32xf32> -> vector<4x32xf32>
    %233 = arith.addf %232, %212 : vector<4x32xf32>
    %234 = math.tanh %233 : vector<4x32xf32>
    %235 = tpu.concatenate %228, %234 in 1 : vector<4x32xf32>, vector<4x32xf32> -> vector<4x64xf32>
    %cst_63 = arith.constant dense<0.000000e+00> : vector<4x128xf32>
    %236 = tpu.matmul %235, %204, %cst_63 {dimension_numbers = #tpu.dot_dimension_numbers<[1], [0], [0], [1], [0, 0, 1, 1], [], []>} : vector<4x64xf32>, vector<64x128xf32>, vector<4x128xf32> -> vector<4x128xf32>
    %237 = arith.addf %203, %236 : vector<4x128xf32>
    %238 = arith.negf %237 : vector<4x128xf32>
    %239 = math.exp %238 : vector<4x128xf32>
    %cst_64 = arith.constant 1.000000e+00 : f32
    %240 = vector.broadcast %cst_64 : f32 to vector<4x128xf32>
    %241 = arith.addf %240, %239 : vector<4x128xf32>
    %242 = arith.divf %240, %241 : vector<4x128xf32>
    %243 = math.tanh %237 : vector<4x128xf32>
    %244 = vector.extract_strided_slice %242 {offsets = [0, 0], sizes = [4, 32], strides = [1, 1]} : vector<4x128xf32> to vector<4x32xf32>
    %245 = vector.extract_strided_slice %242 {offsets = [0, 32], sizes = [4, 32], strides = [1, 1]} : vector<4x128xf32> to vector<4x32xf32>
    %246 = vector.extract_strided_slice %243 {offsets = [0, 64], sizes = [4, 32], strides = [1, 1]} : vector<4x128xf32> to vector<4x32xf32>
    %247 = vector.extract_strided_slice %242 {offsets = [0, 96], sizes = [4, 32], strides = [1, 1]} : vector<4x128xf32> to vector<4x32xf32>
    %248 = arith.mulf %245, %226 : vector<4x32xf32>
    %249 = arith.mulf %244, %246 : vector<4x32xf32>
    %250 = arith.addf %248, %249 : vector<4x32xf32>
    %251 = math.tanh %250 : vector<4x32xf32>
    %252 = arith.mulf %247, %251 : vector<4x32xf32>
    %cst_65 = arith.constant dense<0.000000e+00> : vector<4x32xf32>
    %253 = tpu.matmul %252, %205, %cst_65 {dimension_numbers = #tpu.dot_dimension_numbers<[1], [0], [0], [1], [0, 0, 1, 1], [], []>} : vector<4x32xf32>, vector<32x32xf32>, vector<4x32xf32> -> vector<4x32xf32>
    %254 = arith.addf %253, %209 : vector<4x32xf32>
    %255 = math.tanh %254 : vector<4x32xf32>
    %cst_66 = arith.constant dense<0.000000e+00> : vector<4x32xf32>
    %256 = tpu.matmul %255, %206, %cst_66 {dimension_numbers = #tpu.dot_dimension_numbers<[1], [0], [0], [1], [0, 0, 1, 1], [], []>} : vector<4x32xf32>, vector<32x32xf32>, vector<4x32xf32> -> vector<4x32xf32>
    %257 = arith.addf %256, %212 : vector<4x32xf32>
    %258 = math.tanh %257 : vector<4x32xf32>
    %259 = tpu.concatenate %252, %258 in 1 : vector<4x32xf32>, vector<4x32xf32> -> vector<4x64xf32>
    %cst_67 = arith.constant dense<0.000000e+00> : vector<4x128xf32>
    %260 = tpu.matmul %259, %204, %cst_67 {dimension_numbers = #tpu.dot_dimension_numbers<[1], [0], [0], [1], [0, 0, 1, 1], [], []>} : vector<4x64xf32>, vector<64x128xf32>, vector<4x128xf32> -> vector<4x128xf32>
    %261 = arith.addf %203, %260 : vector<4x128xf32>
    %262 = arith.negf %261 : vector<4x128xf32>
    %263 = math.exp %262 : vector<4x128xf32>
    %cst_68 = arith.constant 1.000000e+00 : f32
    %264 = vector.broadcast %cst_68 : f32 to vector<4x128xf32>
    %265 = arith.addf %264, %263 : vector<4x128xf32>
    %266 = arith.divf %264, %265 : vector<4x128xf32>
    %267 = math.tanh %261 : vector<4x128xf32>
    %268 = vector.extract_strided_slice %266 {offsets = [0, 0], sizes = [4, 32], strides = [1, 1]} : vector<4x128xf32> to vector<4x32xf32>
    %269 = vector.extract_strided_slice %266 {offsets = [0, 32], sizes = [4, 32], strides = [1, 1]} : vector<4x128xf32> to vector<4x32xf32>
    %270 = vector.extract_strided_slice %267 {offsets = [0, 64], sizes = [4, 32], strides = [1, 1]} : vector<4x128xf32> to vector<4x32xf32>
    %271 = vector.extract_strided_slice %266 {offsets = [0, 96], sizes = [4, 32], strides = [1, 1]} : vector<4x128xf32> to vector<4x32xf32>
    %272 = arith.mulf %269, %250 : vector<4x32xf32>
    %273 = arith.mulf %268, %270 : vector<4x32xf32>
    %274 = arith.addf %272, %273 : vector<4x32xf32>
    %275 = math.tanh %274 : vector<4x32xf32>
    %276 = arith.mulf %271, %275 : vector<4x32xf32>
    %cst_69 = arith.constant dense<0.000000e+00> : vector<4x32xf32>
    %277 = tpu.matmul %276, %205, %cst_69 {dimension_numbers = #tpu.dot_dimension_numbers<[1], [0], [0], [1], [0, 0, 1, 1], [], []>} : vector<4x32xf32>, vector<32x32xf32>, vector<4x32xf32> -> vector<4x32xf32>
    %278 = arith.addf %277, %209 : vector<4x32xf32>
    %279 = math.tanh %278 : vector<4x32xf32>
    %cst_70 = arith.constant dense<0.000000e+00> : vector<4x32xf32>
    %280 = tpu.matmul %279, %206, %cst_70 {dimension_numbers = #tpu.dot_dimension_numbers<[1], [0], [0], [1], [0, 0, 1, 1], [], []>} : vector<4x32xf32>, vector<32x32xf32>, vector<4x32xf32> -> vector<4x32xf32>
    %281 = arith.addf %280, %212 : vector<4x32xf32>
    %282 = math.tanh %281 : vector<4x32xf32>
    %283 = tpu.concatenate %276, %282 in 1 : vector<4x32xf32>, vector<4x32xf32> -> vector<4x64xf32>
    %cst_71 = arith.constant dense<0.000000e+00> : vector<4x128xf32>
    %284 = tpu.matmul %283, %204, %cst_71 {dimension_numbers = #tpu.dot_dimension_numbers<[1], [0], [0], [1], [0, 0, 1, 1], [], []>} : vector<4x64xf32>, vector<64x128xf32>, vector<4x128xf32> -> vector<4x128xf32>
    %285 = arith.addf %203, %284 : vector<4x128xf32>
    %286 = arith.negf %285 : vector<4x128xf32>
    %287 = math.exp %286 : vector<4x128xf32>
    %cst_72 = arith.constant 1.000000e+00 : f32
    %288 = vector.broadcast %cst_72 : f32 to vector<4x128xf32>
    %289 = arith.addf %288, %287 : vector<4x128xf32>
    %290 = arith.divf %288, %289 : vector<4x128xf32>
    %291 = math.tanh %285 : vector<4x128xf32>
    %292 = vector.extract_strided_slice %290 {offsets = [0, 0], sizes = [4, 32], strides = [1, 1]} : vector<4x128xf32> to vector<4x32xf32>
    %293 = vector.extract_strided_slice %290 {offsets = [0, 32], sizes = [4, 32], strides = [1, 1]} : vector<4x128xf32> to vector<4x32xf32>
    %294 = vector.extract_strided_slice %291 {offsets = [0, 64], sizes = [4, 32], strides = [1, 1]} : vector<4x128xf32> to vector<4x32xf32>
    %295 = vector.extract_strided_slice %290 {offsets = [0, 96], sizes = [4, 32], strides = [1, 1]} : vector<4x128xf32> to vector<4x32xf32>
    %296 = arith.mulf %293, %274 : vector<4x32xf32>
    %297 = arith.mulf %292, %294 : vector<4x32xf32>
    %298 = arith.addf %296, %297 : vector<4x32xf32>
    %299 = math.tanh %298 : vector<4x32xf32>
    %300 = arith.mulf %295, %299 : vector<4x32xf32>
    %cst_73 = arith.constant dense<0.000000e+00> : vector<4x32xf32>
    %301 = tpu.matmul %300, %205, %cst_73 {dimension_numbers = #tpu.dot_dimension_numbers<[1], [0], [0], [1], [0, 0, 1, 1], [], []>} : vector<4x32xf32>, vector<32x32xf32>, vector<4x32xf32> -> vector<4x32xf32>
    %302 = arith.addf %301, %209 : vector<4x32xf32>
    %303 = math.tanh %302 : vector<4x32xf32>
    %cst_74 = arith.constant dense<0.000000e+00> : vector<4x32xf32>
    %304 = tpu.matmul %303, %206, %cst_74 {dimension_numbers = #tpu.dot_dimension_numbers<[1], [0], [0], [1], [0, 0, 1, 1], [], []>} : vector<4x32xf32>, vector<32x32xf32>, vector<4x32xf32> -> vector<4x32xf32>
    %305 = arith.addf %304, %212 : vector<4x32xf32>
    %306 = math.tanh %305 : vector<4x32xf32>
    %307 = tpu.concatenate %300, %306 in 1 : vector<4x32xf32>, vector<4x32xf32> -> vector<4x64xf32>
    %cst_75 = arith.constant dense<0.000000e+00> : vector<4x128xf32>
    %308 = tpu.matmul %307, %204, %cst_75 {dimension_numbers = #tpu.dot_dimension_numbers<[1], [0], [0], [1], [0, 0, 1, 1], [], []>} : vector<4x64xf32>, vector<64x128xf32>, vector<4x128xf32> -> vector<4x128xf32>
    %309 = arith.addf %203, %308 : vector<4x128xf32>
    %310 = arith.negf %309 : vector<4x128xf32>
    %311 = math.exp %310 : vector<4x128xf32>
    %cst_76 = arith.constant 1.000000e+00 : f32
    %312 = vector.broadcast %cst_76 : f32 to vector<4x128xf32>
    %313 = arith.addf %312, %311 : vector<4x128xf32>
    %314 = arith.divf %312, %313 : vector<4x128xf32>
    %315 = math.tanh %309 : vector<4x128xf32>
    %316 = vector.extract_strided_slice %314 {offsets = [0, 0], sizes = [4, 32], strides = [1, 1]} : vector<4x128xf32> to vector<4x32xf32>
    %317 = vector.extract_strided_slice %314 {offsets = [0, 32], sizes = [4, 32], strides = [1, 1]} : vector<4x128xf32> to vector<4x32xf32>
    %318 = vector.extract_strided_slice %315 {offsets = [0, 64], sizes = [4, 32], strides = [1, 1]} : vector<4x128xf32> to vector<4x32xf32>
    %319 = vector.extract_strided_slice %314 {offsets = [0, 96], sizes = [4, 32], strides = [1, 1]} : vector<4x128xf32> to vector<4x32xf32>
    %320 = arith.mulf %317, %298 : vector<4x32xf32>
    %321 = arith.mulf %316, %318 : vector<4x32xf32>
    %322 = arith.addf %320, %321 : vector<4x32xf32>
    %323 = math.tanh %322 : vector<4x32xf32>
    %324 = arith.mulf %319, %323 : vector<4x32xf32>
    %cst_77 = arith.constant dense<0.000000e+00> : vector<4x32xf32>
    %325 = tpu.matmul %324, %205, %cst_77 {dimension_numbers = #tpu.dot_dimension_numbers<[1], [0], [0], [1], [0, 0, 1, 1], [], []>} : vector<4x32xf32>, vector<32x32xf32>, vector<4x32xf32> -> vector<4x32xf32>
    %326 = arith.addf %325, %209 : vector<4x32xf32>
    %327 = math.tanh %326 : vector<4x32xf32>
    %cst_78 = arith.constant dense<0.000000e+00> : vector<4x32xf32>
    %328 = tpu.matmul %327, %206, %cst_78 {dimension_numbers = #tpu.dot_dimension_numbers<[1], [0], [0], [1], [0, 0, 1, 1], [], []>} : vector<4x32xf32>, vector<32x32xf32>, vector<4x32xf32> -> vector<4x32xf32>
    %329 = arith.addf %328, %212 : vector<4x32xf32>
    %330 = math.tanh %329 : vector<4x32xf32>
    %331 = tpu.concatenate %324, %330 in 1 : vector<4x32xf32>, vector<4x32xf32> -> vector<4x64xf32>
    %cst_79 = arith.constant dense<0.000000e+00> : vector<4x128xf32>
    %332 = tpu.matmul %331, %204, %cst_79 {dimension_numbers = #tpu.dot_dimension_numbers<[1], [0], [0], [1], [0, 0, 1, 1], [], []>} : vector<4x64xf32>, vector<64x128xf32>, vector<4x128xf32> -> vector<4x128xf32>
    %333 = arith.addf %203, %332 : vector<4x128xf32>
    %334 = arith.negf %333 : vector<4x128xf32>
    %335 = math.exp %334 : vector<4x128xf32>
    %cst_80 = arith.constant 1.000000e+00 : f32
    %336 = vector.broadcast %cst_80 : f32 to vector<4x128xf32>
    %337 = arith.addf %336, %335 : vector<4x128xf32>
    %338 = arith.divf %336, %337 : vector<4x128xf32>
    %339 = math.tanh %333 : vector<4x128xf32>
    %340 = vector.extract_strided_slice %338 {offsets = [0, 0], sizes = [4, 32], strides = [1, 1]} : vector<4x128xf32> to vector<4x32xf32>
    %341 = vector.extract_strided_slice %338 {offsets = [0, 32], sizes = [4, 32], strides = [1, 1]} : vector<4x128xf32> to vector<4x32xf32>
    %342 = vector.extract_strided_slice %339 {offsets = [0, 64], sizes = [4, 32], strides = [1, 1]} : vector<4x128xf32> to vector<4x32xf32>
    %343 = vector.extract_strided_slice %338 {offsets = [0, 96], sizes = [4, 32], strides = [1, 1]} : vector<4x128xf32> to vector<4x32xf32>
    %344 = arith.mulf %341, %322 : vector<4x32xf32>
    %345 = arith.mulf %340, %342 : vector<4x32xf32>
    %346 = arith.addf %344, %345 : vector<4x32xf32>
    %347 = math.tanh %346 : vector<4x32xf32>
    %348 = arith.mulf %343, %347 : vector<4x32xf32>
    %cst_81 = arith.constant dense<0.000000e+00> : vector<4x32xf32>
    %349 = tpu.matmul %348, %205, %cst_81 {dimension_numbers = #tpu.dot_dimension_numbers<[1], [0], [0], [1], [0, 0, 1, 1], [], []>} : vector<4x32xf32>, vector<32x32xf32>, vector<4x32xf32> -> vector<4x32xf32>
    %350 = arith.addf %349, %209 : vector<4x32xf32>
    %351 = math.tanh %350 : vector<4x32xf32>
    %cst_82 = arith.constant dense<0.000000e+00> : vector<4x32xf32>
    %352 = tpu.matmul %351, %206, %cst_82 {dimension_numbers = #tpu.dot_dimension_numbers<[1], [0], [0], [1], [0, 0, 1, 1], [], []>} : vector<4x32xf32>, vector<32x32xf32>, vector<4x32xf32> -> vector<4x32xf32>
    %353 = arith.addf %352, %212 : vector<4x32xf32>
    %354 = math.tanh %353 : vector<4x32xf32>
    %355 = tpu.concatenate %348, %354 in 1 : vector<4x32xf32>, vector<4x32xf32> -> vector<4x64xf32>
    %cst_83 = arith.constant dense<0.000000e+00> : vector<4x128xf32>
    %356 = tpu.matmul %355, %204, %cst_83 {dimension_numbers = #tpu.dot_dimension_numbers<[1], [0], [0], [1], [0, 0, 1, 1], [], []>} : vector<4x64xf32>, vector<64x128xf32>, vector<4x128xf32> -> vector<4x128xf32>
    %357 = arith.addf %203, %356 : vector<4x128xf32>
    %358 = arith.negf %357 : vector<4x128xf32>
    %359 = math.exp %358 : vector<4x128xf32>
    %cst_84 = arith.constant 1.000000e+00 : f32
    %360 = vector.broadcast %cst_84 : f32 to vector<4x128xf32>
    %361 = arith.addf %360, %359 : vector<4x128xf32>
    %362 = arith.divf %360, %361 : vector<4x128xf32>
    %363 = math.tanh %357 : vector<4x128xf32>
    %364 = vector.extract_strided_slice %362 {offsets = [0, 0], sizes = [4, 32], strides = [1, 1]} : vector<4x128xf32> to vector<4x32xf32>
    %365 = vector.extract_strided_slice %362 {offsets = [0, 32], sizes = [4, 32], strides = [1, 1]} : vector<4x128xf32> to vector<4x32xf32>
    %366 = vector.extract_strided_slice %363 {offsets = [0, 64], sizes = [4, 32], strides = [1, 1]} : vector<4x128xf32> to vector<4x32xf32>
    %367 = vector.extract_strided_slice %362 {offsets = [0, 96], sizes = [4, 32], strides = [1, 1]} : vector<4x128xf32> to vector<4x32xf32>
    %368 = arith.mulf %365, %346 : vector<4x32xf32>
    %369 = arith.mulf %364, %366 : vector<4x32xf32>
    %370 = arith.addf %368, %369 : vector<4x32xf32>
    %371 = math.tanh %370 : vector<4x32xf32>
    %372 = arith.mulf %367, %371 : vector<4x32xf32>
    %cst_85 = arith.constant dense<0.000000e+00> : vector<4x32xf32>
    %373 = tpu.matmul %372, %205, %cst_85 {dimension_numbers = #tpu.dot_dimension_numbers<[1], [0], [0], [1], [0, 0, 1, 1], [], []>} : vector<4x32xf32>, vector<32x32xf32>, vector<4x32xf32> -> vector<4x32xf32>
    %374 = arith.addf %373, %209 : vector<4x32xf32>
    %375 = math.tanh %374 : vector<4x32xf32>
    %cst_86 = arith.constant dense<0.000000e+00> : vector<4x32xf32>
    %376 = tpu.matmul %375, %206, %cst_86 {dimension_numbers = #tpu.dot_dimension_numbers<[1], [0], [0], [1], [0, 0, 1, 1], [], []>} : vector<4x32xf32>, vector<32x32xf32>, vector<4x32xf32> -> vector<4x32xf32>
    %377 = arith.addf %376, %212 : vector<4x32xf32>
    %378 = math.tanh %377 : vector<4x32xf32>
    %379 = tpu.concatenate %372, %378 in 1 : vector<4x32xf32>, vector<4x32xf32> -> vector<4x64xf32>
    %cst_87 = arith.constant dense<0.000000e+00> : vector<4x128xf32>
    %380 = tpu.matmul %379, %204, %cst_87 {dimension_numbers = #tpu.dot_dimension_numbers<[1], [0], [0], [1], [0, 0, 1, 1], [], []>} : vector<4x64xf32>, vector<64x128xf32>, vector<4x128xf32> -> vector<4x128xf32>
    %381 = arith.addf %203, %380 : vector<4x128xf32>
    %382 = arith.negf %381 : vector<4x128xf32>
    %383 = math.exp %382 : vector<4x128xf32>
    %cst_88 = arith.constant 1.000000e+00 : f32
    %384 = vector.broadcast %cst_88 : f32 to vector<4x128xf32>
    %385 = arith.addf %384, %383 : vector<4x128xf32>
    %386 = arith.divf %384, %385 : vector<4x128xf32>
    %387 = math.tanh %381 : vector<4x128xf32>
    %388 = vector.extract_strided_slice %386 {offsets = [0, 0], sizes = [4, 32], strides = [1, 1]} : vector<4x128xf32> to vector<4x32xf32>
    %389 = vector.extract_strided_slice %386 {offsets = [0, 32], sizes = [4, 32], strides = [1, 1]} : vector<4x128xf32> to vector<4x32xf32>
    %390 = vector.extract_strided_slice %387 {offsets = [0, 64], sizes = [4, 32], strides = [1, 1]} : vector<4x128xf32> to vector<4x32xf32>
    %391 = vector.extract_strided_slice %386 {offsets = [0, 96], sizes = [4, 32], strides = [1, 1]} : vector<4x128xf32> to vector<4x32xf32>
    %392 = arith.mulf %389, %370 : vector<4x32xf32>
    %393 = arith.mulf %388, %390 : vector<4x32xf32>
    %394 = arith.addf %392, %393 : vector<4x32xf32>
    %395 = math.tanh %394 : vector<4x32xf32>
    %396 = arith.mulf %391, %395 : vector<4x32xf32>
    %cst_89 = arith.constant dense<0.000000e+00> : vector<4x32xf32>
    %397 = tpu.matmul %396, %205, %cst_89 {dimension_numbers = #tpu.dot_dimension_numbers<[1], [0], [0], [1], [0, 0, 1, 1], [], []>} : vector<4x32xf32>, vector<32x32xf32>, vector<4x32xf32> -> vector<4x32xf32>
    %398 = arith.addf %397, %209 : vector<4x32xf32>
    %399 = math.tanh %398 : vector<4x32xf32>
    %cst_90 = arith.constant dense<0.000000e+00> : vector<4x32xf32>
    %400 = tpu.matmul %399, %206, %cst_90 {dimension_numbers = #tpu.dot_dimension_numbers<[1], [0], [0], [1], [0, 0, 1, 1], [], []>} : vector<4x32xf32>, vector<32x32xf32>, vector<4x32xf32> -> vector<4x32xf32>
    %401 = arith.addf %400, %212 : vector<4x32xf32>
    %402 = math.tanh %401 : vector<4x32xf32>
    %403 = tpu.concatenate %234, %258, %282, %306, %330, %354, %378, %402 in 0 : vector<4x32xf32>, vector<4x32xf32>, vector<4x32xf32>, vector<4x32xf32>, vector<4x32xf32>, vector<4x32xf32>, vector<4x32xf32>, vector<4x32xf32> -> vector<32x32xf32>
    %c0_91 = arith.constant 0 : index
    %c0_92 = arith.constant 0 : index
    %404 = vector.load %arg14[%c0_91, %c0_92] : memref<32x32xf32, #tpu.memory_space<vmem>>, vector<32x32xf32>
    %cst_93 = arith.constant dense<0.000000e+00> : vector<32x32xf32>
    %405 = tpu.matmul %403, %404, %cst_93 {dimension_numbers = #tpu.dot_dimension_numbers<[1], [0], [0], [1], [0, 0, 1, 1], [], []>} : vector<32x32xf32>, vector<32x32xf32>, vector<32x32xf32> -> vector<32x32xf32>
    %c0_94 = arith.constant 0 : index
    %c0_95 = arith.constant 0 : index
    %406 = vector.load %arg15[%c0_94, %c0_95] : memref<1x32xf32, #tpu.memory_space<vmem>>, vector<1x32xf32>
    %407 = vector.broadcast %406 : vector<1x32xf32> to vector<32x32xf32>
    %408 = arith.addf %405, %407 : vector<32x32xf32>
    %cst_96 = arith.constant 0.000000e+00 : f32
    %409 = vector.broadcast %cst_96 : f32 to vector<32x32xf32>
    %410 = arith.maximumf %408, %409 : vector<32x32xf32>
    %c0_97 = arith.constant 0 : index
    %c0_98 = arith.constant 0 : index
    %411 = vector.load %arg16[%c0_97, %c0_98] : memref<32x128xf32, #tpu.memory_space<vmem>>, vector<32x128xf32>
    %cst_99 = arith.constant dense<0.000000e+00> : vector<32x128xf32>
    %412 = tpu.matmul %403, %411, %cst_99 {dimension_numbers = #tpu.dot_dimension_numbers<[1], [0], [0], [1], [0, 0, 1, 1], [], []>} : vector<32x32xf32>, vector<32x128xf32>, vector<32x128xf32> -> vector<32x128xf32>
    %c0_100 = arith.constant 0 : index
    %c0_101 = arith.constant 0 : index
    %413 = vector.load %arg17[%c0_100, %c0_101] : memref<32x128xf32, #tpu.memory_space<vmem>>, vector<32x128xf32>
    %cst_102 = arith.constant dense<0.000000e+00> : vector<32x128xf32>
    %414 = tpu.matmul %410, %413, %cst_102 {dimension_numbers = #tpu.dot_dimension_numbers<[1], [0], [0], [1], [0, 0, 1, 1], [], []>} : vector<32x32xf32>, vector<32x128xf32>, vector<32x128xf32> -> vector<32x128xf32>
    %415 = arith.addf %412, %414 : vector<32x128xf32>
    %c0_103 = arith.constant 0 : index
    %c0_104 = arith.constant 0 : index
    %416 = vector.load %arg18[%c0_103, %c0_104] : memref<1x128xf32, #tpu.memory_space<vmem>>, vector<1x128xf32>
    %417 = vector.broadcast %416 : vector<1x128xf32> to vector<32x128xf32>
    %418 = arith.addf %415, %417 : vector<32x128xf32>
    %419 = tpu.iota {dimensions = array<i32: 1>} : vector<1x128xi32>
    %c24_i32 = arith.constant 24 : i32
    %420 = vector.broadcast %c24_i32 : i32 to vector<1x128xi32>
    %421 = arith.cmpi eq, %419, %420 : vector<1x128xi32>
    %c25_i32 = arith.constant 25 : i32
    %422 = vector.broadcast %c25_i32 : i32 to vector<1x128xi32>
    %423 = arith.cmpi eq, %419, %422 : vector<1x128xi32>
    %cst_105 = arith.constant 0.000000e+00 : f32
    %424 = vector.shape_cast %195 : vector<1x1xf32> to vector<1x1xf32>
    %425 = vector.broadcast %424 : vector<1x1xf32> to vector<1x128xf32>
    %426 = vector.broadcast %cst_105 : f32 to vector<1x128xf32>
    %427 = arith.select %423, %425, %426 : vector<1x128xi1>, vector<1x128xf32>
    %428 = vector.shape_cast %182 : vector<1x1xf32> to vector<1x1xf32>
    %429 = vector.broadcast %428 : vector<1x1xf32> to vector<1x128xf32>
    %430 = arith.select %421, %429, %427 : vector<1x128xi1>, vector<1x128xf32>
    %c0_106 = arith.constant 0 : index
    %c0_107 = arith.constant 0 : index
    %431 = vector.load %arg19[%c0_106, %c0_107] : memref<16x128xf32, #tpu.memory_space<vmem>>, vector<16x128xf32>
    %cst_108 = arith.constant dense<0.000000e+00> : vector<4x128xf32>
    %432 = tpu.matmul %169, %431, %cst_108 {dimension_numbers = #tpu.dot_dimension_numbers<[1], [0], [0], [1], [0, 0, 1, 1], [], []>} : vector<4x16xf32>, vector<16x128xf32>, vector<4x128xf32> -> vector<4x128xf32>
    %433 = vector.broadcast %430 : vector<1x128xf32> to vector<4x128xf32>
    %434 = arith.addf %432, %433 : vector<4x128xf32>
    %c0_109 = arith.constant 0 : index
    %c0_110 = arith.constant 0 : index
    %435 = vector.load %arg20[%c0_109, %c0_110] : memref<32x128xf32, #tpu.memory_space<vmem>>, vector<32x128xf32>
    tpu.vector_store %arg20[%c0_109, %c0_110], %418 {strides = array<i32>} : memref<32x128xf32, #tpu.memory_space<vmem>>, vector<32x128xf32>,
    %436 = vector.extract_strided_slice %418 {offsets = [0, 0], sizes = [4, 128], strides = [1, 1]} : vector<32x128xf32> to vector<4x128xf32>
    %437 = arith.addf %436, %434 : vector<4x128xf32>
    %c0_111 = arith.constant 0 : index
    %c0_112 = arith.constant 0 : index
    %438 = vector.load %arg20[%c0_111, %c0_112] : memref<32x128xf32, #tpu.memory_space<vmem>>, vector<4x128xf32>
    tpu.vector_store %arg20[%c0_111, %c0_112], %437 {strides = array<i32>} : memref<32x128xf32, #tpu.memory_space<vmem>>, vector<4x128xf32>,
    return
  }
}

</mosaic_0001>

<bundles_post_ra>
// kernel: forward.1
= control target key start
LH: loop header
LB: loop body
LE: loop exit
PB: predicated region body
PF: predicated region fallthrough
CT: control target
= control target key end

     0   :  { %vm74_vm0 = vcmask 64512   ;;  %s2181_s28 = smov 64   ;;  %vm160_vm5 = vcmask 261120   ;;  %s2898_s1 = inlined_call_operand.vmem [shape: f32[8,128], index: 1, kind: input, shape index: {}]   ;;  %s2899_s0 = inlined_call_operand.vmem [shape: f32[32,8], index: 0, kind: input, shape index: {}]   ;;  %s2900_s3 = inlined_call_operand.vmem [shape: f32[1,128], index: 3, kind: input, shape index: {}]   ;;  %s2901_s2 = inlined_call_operand.vmem [shape: f32[32,128], index: 2, kind: input, shape index: {}]   ;;  %s2902_s4 = inlined_call_operand.vmem [shape: f32[16,32], index: 4, kind: input, shape index: {}]   ;;  %s2903_s5 = inlined_call_operand.vmem [shape: f32[1,16], index: 5, kind: input, shape index: {}]   ;;  %s2904_s6 = inlined_call_operand.vmem [shape: f32[32,128], index: 6, kind: input, shape index: {}]   ;;  %s2905_s7 = inlined_call_operand.vmem [shape: f32[1,128], index: 7, kind: input, shape index: {}]   ;;  %s2906_s9 = inlined_call_operand.vmem [shape: f32[1,128], index: 9, kind: input, shape index: {}]   ;;  %s2907_s11 = inlined_call_operand.vmem [shape: f32[1,32], index: 11, kind: input, shape index: {}]   ;;  %s2908_s10 = inlined_call_operand.vmem [shape: f32[32,32], index: 10, kind: input, shape index: {}]   ;;  %s2909_s13 = inlined_call_operand.vmem [shape: f32[1,32], index: 13, kind: input, shape index: {}]   ;;  %s2910_s12 = inlined_call_operand.vmem [shape: f32[32,32], index: 12, kind: input, shape index: {}]   ;;  %s2911_s8 = inlined_call_operand.vmem [shape: f32[64,128], index: 8, kind: input, shape index: {}]   ;;  %s2912_s14 = inlined_call_operand.vmem [shape: f32[32,32], index: 14, kind: input, shape index: {}]   ;;  %s2913_s15 = inlined_call_operand.vmem [shape: f32[1,32], index: 15, kind: input, shape index: {}]   ;;  %s2914_s19 = inlined_call_operand.vmem [shape: f32[16,128], index: 19, kind: input, shape index: {}]   ;;  %s2915_s17 = inlined_call_operand.vmem [shape: f32[32,128], index: 17, kind: input, shape index: {}]   ;;  %s2916_s16 = inlined_call_operand.vmem [shape: f32[32,128], index: 16, kind: input, shape index: {}]   ;;  %s2917_s18 = inlined_call_operand.vmem [shape: f32[1,128], index: 18, kind: input, shape index: {}]   ;;  %s2918_s20 = inlined_call_operand.vmem [shape: f32[32,128], index: 20, kind: output, shape index: {}]  }
   0x1   :  { %2922 = sst [smem:[#allocation2_spill]] %s2898_s1 }
   0x2   :  { %2923 = sst [smem:[#allocation3_spill]] %s2899_s0 }
   0x3   :  { %2924 = sst [smem:[#allocation4_spill]] %s2900_s3 }
   0x4   :  { %2925 = sst [smem:[#allocation5_spill]] %s2901_s2 }
   0x5   :  { %2926 = sst [smem:[#allocation6_spill]] %s2902_s4  ;;  %s2182_s4 = smov 32  }
   0x6   :  { %s2927_s23 = sld [smem:[#allocation2_spill]] }
   0x7   :  { %s2928_s25 = sld [smem:[#allocation3_spill]] }
   0x8   :  { %s2929_s27 = sld [smem:[#allocation4_spill]] }
   0x9   :  { %s2930_s1 = sld [smem:[#allocation5_spill]] }
   0xa   :  { %s2931_s0 = sld [smem:[#allocation6_spill]] }
   0xc   :  { %v69_v0 = vld [vmem:[%s2927_s23] sm:$0xff] }
   0xd   :  { %v65_v1 = vld [vmem:[%s2928_s25] sm:$0xff]  ;;  %102 = vmatpush.msra.mxu0 %v69_v0  ;;  %v66_v59 = vld [vmem:[%s2928_s25 + $0x8] sm:$0xff] }
   0xe   :  { %1929 = vmatmul.msk.f32.vlgmr.msra.gmra.mxu0 %vm74_vm0, %v65_v1  ;;  %v2301_v2 = vld [vmem:[%s2929_s27] ss:$0 sm:$0xff] }
   0xf   :  { %v119_v25 = vld [vmem:[%s2930_s1 + $0x18] sm:$0xff]  ;;  %v118_v26 = vld [vmem:[%s2930_s1 + $0x10] sm:$0xff]  ;;  %v117_v27 = vld [vmem:[%s2930_s1 + $0x8] sm:$0xff] }
  0x10   :  { %175 = vmatpush.msra.mxu2 %v119_v25  ;;  %311 = vmatpush.msra.mxu3 %v119_v25  ;;  %v116_v28 = vld [vmem:[%s2930_s1] sm:$0xff] }
  0x11   :  { %381 = vmatpush.msra.mxu1 %v119_v25 }
  0x12   :  { %176 = vmatpush.msra.mxu2 %v118_v26  ;;  %312 = vmatpush.msra.mxu3 %v118_v26 }
  0x13   :  { %382 = vmatpush.msra.mxu1 %v118_v26 }
  0x14   :  { %177 = vmatpush.msra.mxu2 %v117_v27  ;;  %313 = vmatpush.msra.mxu3 %v117_v27 }
  0x15   :  { %383 = vmatpush.msra.mxu1 %v117_v27 }
  0x16   :  { %178 = vmatpush.msra.mxu2 %v116_v28  ;;  %314 = vmatpush.msra.mxu3 %v116_v28 }
  0x17   :  { %384 = vmatpush.msra.mxu1 %v116_v28  ;;  %1930 = vmatmul.msk.f32.gmra.mxu0 %vm74_vm0, %v66_v59 }
  0x18   :  { %245 = vmatpush.msrb.mxu2 %v119_v25  ;;  %517 = vmatpush.msrb.mxu3 %v119_v25 }
  0x19   :  { %583 = vmatpush.msrb.mxu1 %v119_v25 }
  0x1a   :  { %246 = vmatpush.msrb.mxu2 %v118_v26  ;;  %518 = vmatpush.msrb.mxu3 %v118_v26 }
  0x1b   :  { %584 = vmatpush.msrb.mxu1 %v118_v26 }
  0x1c   :  { %247 = vmatpush.msrb.mxu2 %v117_v27  ;;  %519 = vmatpush.msrb.mxu3 %v117_v27 }
  0x1d   :  { %585 = vmatpush.msrb.mxu1 %v117_v27 }
  0x1e   :  { %248 = vmatpush.msrb.mxu2 %v116_v28  ;;  %520 = vmatpush.msrb.mxu3 %v116_v28 }
  0x1f   :  { %586 = vmatpush.msrb.mxu1 %v116_v28 }
  0x8b   :  { %v104_v3 = vpop.f32.mrf.mxu0 }
  0x8c   :  { %v2304_v4 = vadd.f32 %v2301_v2, %v104_v3 }
  0x8e   :  { %2011 = vtanh.f32 %v2304_v4  ;;  %v1933_v6 = vmul.f32 -1.442695, %v2304_v4 }
  0x90   :  { %2013 = vpow2.f32 %v1933_v6 }
  0x94   :  { %v2012_v5 = vpop.eup %2011  ;;  %v107_v61 = vpop.f32.mrf.mxu0 }
  0x95   :  { %142 = vrot.lane.b32.xlu0 %v2012_v5, %s2181_s28  ;;  %v108_v62 = vadd.f32 %v2301_v2, %v107_v61 }
  0x96   :  { %v2014_v7 = vpop.eup %2013 }
  0x97   :  { %v123_v8 = vadd.f32 1.0, %v2014_v7 }
  0x99   :  { %2015 = vrcp.f32 %v123_v8  ;;  %v135_v14 = vand.u32 2147483648, %v123_v8  ;;  %vm129_vm2 = vweird.f32 %v123_v8  ;;  %v133_v15 = vand.u32 2147483647, %v123_v8 }
  0x9b   :  { %v136_v17 = vor.u32 1.1754944e-38, %v135_v14  ;;  %vm134_vm4 = vcmp.eq.f32.partialorder %v133_v15, 8.507059e+37 }
  0x9f   :  { %v2016_v9 = vpop.eup %2015 }
  0xa0   :  { %v125_v10 = vmul.f32 %v2016_v9, %v123_v8  ;;  %vm130_vm1 = vweird.f32 %v2016_v9 }
  0xa1   :  { %vm131_vm3 = vmor %vm129_vm2, %vm130_vm1 }
  0xa2   :  { %v126_v11 = vsub.f32 1.0, %v125_v10 }
  0xa4   :  { %v127_v12 = vmul.f32 %v2016_v9, %v126_v11 }
  0xa6   :  { %v128_v13 = vadd.f32 %v2016_v9, %v127_v12 }
  0xa8   :  { %v132_v16 = vsel %vm131_vm3, %v2016_v9, %v128_v13 }
  0xa9   :  { %v137_v19 = vsel %vm134_vm4, %v136_v17, %v132_v16 }
  0xaa   :  { %v140_v21 = vmul.f32 0.0, %v137_v19 }
 0x107   :  { %v143_v18 = vpop.permute.xlu0 %142 }
 0x108   :  { %v145_v20 = vmul.f32 %v143_v18, %v137_v19 }
 0x10a   :  { %147 = vrot.lane.b32.xlu0 %v145_v20, %s2182_s4 }
 0x17c   :  { %v148_v22 = vpop.permute.xlu0 %147 }
 0x17d   :  { %v2310_v23 = vadd.f32 %v148_v22, %v140_v21 }
 0x17f   :  { %2017 = vtanh.f32 %v2310_v23  ;;  %v208_v51 = vrot.slane %v2310_v23, 4 }
 0x185   :  { %v2018_v24 = vpop.eup %2017 }
 0x186   :  { %153 = vrot.lane.b32.xlu1 %v2018_v24, %s2181_s28 }
 0x1f8   :  { %v154_v29 = vpop.permute.xlu1 %153 }
 0x1f9   :  { %v156_v30 = vmul.f32 %v154_v29, %v137_v19 }
 0x1fb   :  { %158 = vrot.lane.b32.xlu1 %v156_v30, %s2182_s4 }
 0x26d   :  { %v159_v31 = vpop.permute.xlu1 %158 }
 0x26e   :  { %1934 = vmatmul.msk.f32.vlgmr.msra.gmra.mxu2 %vm160_vm5, %v159_v31 }
 0x26f   :  { %447 = vmatpush.msra.mxu2 %v119_v25 }
 0x271   :  { %448 = vmatpush.msra.mxu2 %v118_v26 }
 0x273   :  { %449 = vmatpush.msra.mxu2 %v117_v27 }
 0x275   :  { %450 = vmatpush.msra.mxu2 %v116_v28 }
 0x2f1   :  { %v180_v32 = vpop.f32.mrf.mxu2 }
 0x2f2   :  { %v184_v33 = vrot.slane %v180_v32, 4 }
 0x2f4   :  { %v186_v34 = vadd.f32 %v184_v33, %v2304_v4 }
 0x2f6   :  { %2019 = vtanh.f32 %v186_v34  ;;  %v1935_v36 = vmul.f32 -1.442695, %v186_v34 }
 0x2f8   :  { %2021 = vpow2.f32 %v1935_v36 }
 0x2fc   :  { %v2020_v35 = vpop.eup %2019 }
 0x2fd   :  { %212 = vrot.lane.b32.xlu2 %v2020_v35, %s2181_s28 }
 0x2fe   :  { %v2022_v37 = vpop.eup %2021 }
 0x2ff   :  { %v190_v38 = vadd.f32 1.0, %v2022_v37 }
 0x301   :  { %2023 = vrcp.f32 %v190_v38  ;;  %v202_v44 = vand.u32 2147483648, %v190_v38  ;;  %vm196_vm7 = vweird.f32 %v190_v38  ;;  %v200_v45 = vand.u32 2147483647, %v190_v38 }
 0x303   :  { %v203_v47 = vor.u32 1.1754944e-38, %v202_v44  ;;  %vm201_vm9 = vcmp.eq.f32.partialorder %v200_v45, 8.507059e+37 }
 0x307   :  { %v2024_v39 = vpop.eup %2023 }
 0x308   :  { %v192_v40 = vmul.f32 %v2024_v39, %v190_v38  ;;  %vm197_vm6 = vweird.f32 %v2024_v39 }
 0x309   :  { %vm198_vm8 = vmor %vm196_vm7, %vm197_vm6 }
 0x30a   :  { %v193_v41 = vsub.f32 1.0, %v192_v40 }
 0x30c   :  { %v194_v42 = vmul.f32 %v2024_v39, %v193_v41 }
 0x30e   :  { %v195_v43 = vadd.f32 %v2024_v39, %v194_v42 }
 0x310   :  { %v199_v46 = vsel %vm198_vm8, %v2024_v39, %v195_v43 }
 0x311   :  { %v204_v49 = vsel %vm201_vm9, %v203_v47, %v199_v46 }
 0x312   :  { %v210_v52 = vmul.f32 %v208_v51, %v204_v49 }
 0x357   :  { %v213_v48 = vpop.permute.xlu2 %212 }
 0x358   :  { %v215_v50 = vmul.f32 %v213_v48, %v204_v49 }
 0x35a   :  { %217 = vrot.lane.b32.xlu2 %v215_v50, %s2182_s4  ;;  %v67_v50 = vld [vmem:[%s2928_s25 + $0x10] sm:$0xff] }
 0x35b   :  { %1931 = vmatmul.msk.f32.gmra.mxu0 %vm74_vm0, %v67_v50 }
 0x3b4   :  { %v218_v53 = vpop.permute.xlu2 %217 }
 0x3b5   :  { %v220_v54 = vadd.f32 %v218_v53, %v210_v52 }
 0x3b7   :  { %2025 = vtanh.f32 %v220_v54  ;;  %v275_v18 = vrot.slane %v220_v54, 4 }
 0x3bd   :  { %v2026_v55 = vpop.eup %2025 }
 0x3be   :  { %223 = vrot.lane.b32.xlu0 %v2026_v55, %s2181_s28 }
 0x3d8   :  { %v110_v55 = vpop.f32.mrf.mxu0 }
 0x430   :  { %v224_v56 = vpop.permute.xlu0 %223 }
 0x431   :  { %v226_v57 = vmul.f32 %v224_v56, %v204_v49  ;;  %v111_v56 = vadd.f32 %v2301_v2, %v110_v55 }
 0x433   :  { %v228_v58 = vrot.slane %v226_v57, 4 }
 0x435   :  { %229 = vrot.lane.b32.xlu1 %v228_v58, %s2182_s4 }
 0x4a7   :  { %v230_v60 = vpop.permute.xlu1 %229 }
 0x4a8   :  { %1936 = vmatmul.msk.f32.vlgmr.msrb.gmra.mxu2 %vm160_vm5, %v230_v60 }
 0x52b   :  { %v250_v63 = vpop.f32.mrf.mxu2 }
 0x52c   :  { %v253_v0 = vadd.f32 %v250_v63, %v108_v62 }
 0x52e   :  { %2027 = vtanh.f32 %v253_v0  ;;  %v1937_v3 = vmul.f32 -1.442695, %v253_v0 }
 0x530   :  { %2029 = vpow2.f32 %v1937_v3 }
 0x534   :  { %v2028_v1 = vpop.eup %2027 }
 0x535   :  { %279 = vrot.lane.b32.xlu2 %v2028_v1, %s2181_s28 }
 0x536   :  { %v2030_v4 = vpop.eup %2029 }
 0x537   :  { %v257_v5 = vadd.f32 1.0, %v2030_v4 }
 0x539   :  { %2031 = vrcp.f32 %v257_v5  ;;  %v269_v11 = vand.u32 2147483648, %v257_v5  ;;  %vm263_vm11 = vweird.f32 %v257_v5  ;;  %v267_v12 = vand.u32 2147483647, %v257_v5 }
 0x53b   :  { %v270_v14 = vor.u32 1.1754944e-38, %v269_v11  ;;  %vm268_vm13 = vcmp.eq.f32.partialorder %v267_v12, 8.507059e+37 }
 0x53f   :  { %v2032_v6 = vpop.eup %2031 }
 0x540   :  { %v259_v7 = vmul.f32 %v2032_v6, %v257_v5  ;;  %vm264_vm10 = vweird.f32 %v2032_v6 }
 0x541   :  { %vm265_vm12 = vmor %vm263_vm11, %vm264_vm10 }
 0x542   :  { %v260_v8 = vsub.f32 1.0, %v259_v7 }
 0x544   :  { %v261_v9 = vmul.f32 %v2032_v6, %v260_v8 }
 0x546   :  { %v262_v10 = vadd.f32 %v2032_v6, %v261_v9 }
 0x548   :  { %v266_v13 = vsel %vm265_vm12, %v2032_v6, %v262_v10 }
 0x549   :  { %v271_v16 = vsel %vm268_vm13, %v270_v14, %v266_v13 }
 0x54a   :  { %v277_v19 = vmul.f32 %v275_v18, %v271_v16 }
 0x58f   :  { %v280_v15 = vpop.permute.xlu2 %279 }
 0x590   :  { %v282_v17 = vmul.f32 %v280_v15, %v271_v16 }
 0x592   :  { %284 = vrot.lane.b32.xlu0 %v282_v17, %s2182_s4 }
 0x604   :  { %v285_v20 = vpop.permute.xlu0 %284 }
 0x605   :  { %v287_v21 = vadd.f32 %v285_v20, %v277_v19 }
 0x607   :  { %2033 = vtanh.f32 %v287_v21  ;;  %v344_v45 = vrot.slane %v287_v21, 4 }
 0x60d   :  { %v2034_v22 = vpop.eup %2033 }
 0x60e   :  { %290 = vrot.lane.b32.xlu1 %v2034_v22, %s2181_s28 }
 0x680   :  { %v291_v23 = vpop.permute.xlu1 %290 }
 0x681   :  { %v293_v24 = vmul.f32 %v291_v23, %v271_v16 }
 0x683   :  { %295 = vrot.lane.b32.xlu2 %v293_v24, %s2182_s4 }
 0x6dd   :  { %v296_v25 = vpop.permute.xlu2 %295 }
 0x6de   :  { %1938 = vmatmul.msk.f32.vlgmr.msra.gmra.mxu3 %vm160_vm5, %v296_v25 }
 0x761   :  { %v316_v26 = vpop.f32.mrf.mxu3 }
 0x762   :  { %v320_v27 = vrot.slane %v316_v26, 4 }
 0x764   :  { %v322_v28 = vadd.f32 %v320_v27, %v108_v62 }
 0x766   :  { %2035 = vtanh.f32 %v322_v28  ;;  %v1939_v30 = vmul.f32 -1.442695, %v322_v28 }
 0x768   :  { %2037 = vpow2.f32 %v1939_v30 }
 0x76c   :  { %v2036_v29 = vpop.eup %2035 }
 0x76d   :  { %348 = vrot.lane.b32.xlu0 %v2036_v29, %s2181_s28 }
 0x76e   :  { %v2038_v31 = vpop.eup %2037 }
 0x76f   :  { %v326_v32 = vadd.f32 1.0, %v2038_v31 }
 0x771   :  { %2039 = vrcp.f32 %v326_v32  ;;  %v338_v38 = vand.u32 2147483648, %v326_v32  ;;  %vm332_vm15 = vweird.f32 %v326_v32  ;;  %v336_v39 = vand.u32 2147483647, %v326_v32 }
 0x773   :  { %v339_v41 = vor.u32 1.1754944e-38, %v338_v38  ;;  %vm337_vm2 = vcmp.eq.f32.partialorder %v336_v39, 8.507059e+37 }
 0x777   :  { %v2040_v33 = vpop.eup %2039 }
 0x778   :  { %v328_v34 = vmul.f32 %v2040_v33, %v326_v32  ;;  %vm333_vm14 = vweird.f32 %v2040_v33 }
 0x779   :  { %vm334_vm1 = vmor %vm332_vm15, %vm333_vm14 }
 0x77a   :  { %v329_v35 = vsub.f32 1.0, %v328_v34 }
 0x77c   :  { %v330_v36 = vmul.f32 %v2040_v33, %v329_v35 }
 0x77e   :  { %v331_v37 = vadd.f32 %v2040_v33, %v330_v36 }
 0x780   :  { %v335_v40 = vsel %vm334_vm1, %v2040_v33, %v331_v37 }
 0x781   :  { %v340_v43 = vsel %vm337_vm2, %v339_v41, %v335_v40 }
 0x782   :  { %v346_v46 = vmul.f32 %v344_v45, %v340_v43 }
 0x7df   :  { %v349_v42 = vpop.permute.xlu0 %348 }
 0x7e0   :  { %v351_v44 = vmul.f32 %v349_v42, %v340_v43 }
 0x7e2   :  { %353 = vrot.lane.b32.xlu1 %v351_v44, %s2182_s4 }
 0x854   :  { %v354_v47 = vpop.permute.xlu1 %353 }
 0x855   :  { %v356_v48 = vadd.f32 %v354_v47, %v346_v46  ;;  %v68_v47 = vld [vmem:[%s2928_s25 + $0x18] sm:$0xff] }
 0x856   :  { %1932 = vmatmul.msk.f32.gmra.mxu0 %vm74_vm0, %v68_v47 }
 0x857   :  { %2041 = vtanh.f32 %v356_v48  ;;  %v411_v12 = vrot.slane %v356_v48, 4 }
 0x85d   :  { %v2042_v49 = vpop.eup %2041 }
 0x85e   :  { %359 = vrot.lane.b32.xlu2 %v2042_v49, %s2181_s28 }
 0x8b8   :  { %v360_v51 = vpop.permute.xlu2 %359 }
 0x8b9   :  { %v362_v52 = vmul.f32 %v360_v51, %v340_v43 }
 0x8bb   :  { %v364_v53 = vrot.slane %v362_v52, 4 }
 0x8bd   :  { %365 = vrot.lane.b32.xlu0 %v364_v53, %s2182_s4 }
 0x8d3   :  { %v113_v49 = vpop.f32.mrf.mxu0 }
 0x8d4   :  { %v114_v50 = vadd.f32 %v2301_v2, %v113_v49 }
 0x92f   :  { %v366_v54 = vpop.permute.xlu0 %365 }
 0x930   :  { %1940 = vmatmul.msk.f32.vlgmr.msra.gmra.mxu1 %vm160_vm5, %v366_v54 }
 0x9ad   :  { %v386_v57 = vpop.f32.mrf.mxu1 }
 0x9ae   :  { %v389_v58 = vadd.f32 %v386_v57, %v111_v56 }
 0x9b0   :  { %2043 = vtanh.f32 %v389_v58  ;;  %v1941_v60 = vmul.f32 -1.442695, %v389_v58 }
 0x9b2   :  { %2045 = vpow2.f32 %v1941_v60 }
 0x9b6   :  { %v2044_v59 = vpop.eup %2043 }
 0x9b7   :  { %415 = vrot.lane.b32.xlu1 %v2044_v59, %s2181_s28 }
 0x9b8   :  { %v2046_v61 = vpop.eup %2045 }
 0x9b9   :  { %v393_v62 = vadd.f32 1.0, %v2046_v61 }
 0x9bb   :  { %2047 = vrcp.f32 %v393_v62  ;;  %v405_v5 = vand.u32 2147483648, %v393_v62  ;;  %vm399_vm4 = vweird.f32 %v393_v62  ;;  %v403_v6 = vand.u32 2147483647, %v393_v62 }
 0x9bd   :  { %v406_v8 = vor.u32 1.1754944e-38, %v405_v5  ;;  %vm404_vm7 = vcmp.eq.f32.partialorder %v403_v6, 8.507059e+37 }
 0x9c1   :  { %v2048_v63 = vpop.eup %2047 }
 0x9c2   :  { %v395_v0 = vmul.f32 %v2048_v63, %v393_v62  ;;  %vm400_vm3 = vweird.f32 %v2048_v63 }
 0x9c3   :  { %vm401_vm6 = vmor %vm399_vm4, %vm400_vm3  ;;  %vm677_vm4 = vcmask 125952  }
 0x9c4   :  { %v396_v1 = vsub.f32 1.0, %v395_v0 }
 0x9c6   :  { %v397_v3 = vmul.f32 %v2048_v63, %v396_v1 }
 0x9c8   :  { %v398_v4 = vadd.f32 %v2048_v63, %v397_v3 }
 0x9ca   :  { %v402_v7 = vsel %vm401_vm6, %v2048_v63, %v398_v4 }
 0x9cb   :  { %v407_v10 = vsel %vm404_vm7, %v406_v8, %v402_v7 }
 0x9cc   :  { %v413_v13 = vmul.f32 %v411_v12, %v407_v10 }
 0xa29   :  { %v416_v9 = vpop.permute.xlu1 %415 }
 0xa2a   :  { %v418_v11 = vmul.f32 %v416_v9, %v407_v10 }
 0xa2c   :  { %420 = vrot.lane.b32.xlu2 %v418_v11, %s2182_s4 }
 0xa86   :  { %v421_v14 = vpop.permute.xlu2 %420 }
 0xa87   :  { %v423_v15 = vadd.f32 %v421_v14, %v413_v13 }
 0xa89   :  { %2049 = vtanh.f32 %v423_v15  ;;  %v480_v39 = vrot.slane %v423_v15, 4 }
 0xa8f   :  { %v2050_v16 = vpop.eup %2049 }
 0xa90   :  { %426 = vrot.lane.b32.xlu0 %v2050_v16, %s2181_s28 }
 0xb02   :  { %v427_v17 = vpop.permute.xlu0 %426 }
 0xb03   :  { %v429_v18 = vmul.f32 %v427_v17, %v407_v10 }
 0xb05   :  { %431 = vrot.lane.b32.xlu1 %v429_v18, %s2182_s4 }
 0xb77   :  { %v432_v19 = vpop.permute.xlu1 %431 }
 0xb78   :  { %1942 = vmatmul.msk.f32.vlgmr.msra.gmra.mxu2 %vm160_vm5, %v432_v19 }
 0xbfb   :  { %v452_v20 = vpop.f32.mrf.mxu2 }
 0xbfc   :  { %v456_v21 = vrot.slane %v452_v20, 4 }
 0xbfe   :  { %v458_v22 = vadd.f32 %v456_v21, %v111_v56 }
 0xc00   :  { %2051 = vtanh.f32 %v458_v22  ;;  %v1943_v24 = vmul.f32 -1.442695, %v458_v22 }
 0xc02   :  { %2053 = vpow2.f32 %v1943_v24 }
 0xc06   :  { %v2052_v23 = vpop.eup %2051 }
 0xc07   :  { %484 = vrot.lane.b32.xlu2 %v2052_v23, %s2181_s28 }
 0xc08   :  { %v2054_v25 = vpop.eup %2053 }
 0xc09   :  { %v462_v26 = vadd.f32 1.0, %v2054_v25 }
 0xc0b   :  { %2055 = vrcp.f32 %v462_v26  ;;  %v474_v32 = vand.u32 2147483648, %v462_v26  ;;  %vm468_vm9 = vweird.f32 %v462_v26  ;;  %v472_v33 = vand.u32 2147483647, %v462_v26 }
 0xc0d   :  { %v475_v35 = vor.u32 1.1754944e-38, %v474_v32  ;;  %vm473_vm11 = vcmp.eq.f32.partialorder %v472_v33, 8.507059e+37 }
 0xc11   :  { %v2056_v27 = vpop.eup %2055 }
 0xc12   :  { %v464_v28 = vmul.f32 %v2056_v27, %v462_v26  ;;  %vm469_vm8 = vweird.f32 %v2056_v27 }
 0xc13   :  { %vm470_vm10 = vmor %vm468_vm9, %vm469_vm8  ;;  %vm701_vm8 = vcmask 130048  }
 0xc14   :  { %v465_v29 = vsub.f32 1.0, %v464_v28 }
 0xc16   :  { %v466_v30 = vmul.f32 %v2056_v27, %v465_v29 }
 0xc18   :  { %v467_v31 = vadd.f32 %v2056_v27, %v466_v30 }
 0xc1a   :  { %v471_v34 = vsel %vm470_vm10, %v2056_v27, %v467_v31 }
 0xc1b   :  { %v476_v37 = vsel %vm473_vm11, %v475_v35, %v471_v34 }
 0xc1c   :  { %v482_v40 = vmul.f32 %v480_v39, %v476_v37 }
 0xc61   :  { %v485_v36 = vpop.permute.xlu2 %484 }
 0xc62   :  { %v487_v38 = vmul.f32 %v485_v36, %v476_v37 }
 0xc64   :  { %489 = vrot.lane.b32.xlu0 %v487_v38, %s2182_s4  ;;  %v635_v38 = vld [vmem:[%s2931_s0] sm:$0xff] }
 0xcd6   :  { %v490_v41 = vpop.permute.xlu0 %489 }
 0xcd7   :  { %v492_v42 = vadd.f32 %v490_v41, %v482_v40 }
 0xcd9   :  { %2057 = vtanh.f32 %v492_v42  ;;  %v547_v5 = vrot.slane %v492_v42, 4 }
 0xcdf   :  { %v2058_v43 = vpop.eup %2057 }
 0xce0   :  { %495 = vrot.lane.b32.xlu1 %v2058_v43, %s2181_s28  ;;  %v2004_v43 = vld [vmem:[%s2903_s5] ss:$0 sm:$0xff] }
 0xd52   :  { %v496_v44 = vpop.permute.xlu1 %495 }
 0xd53   :  { %v498_v45 = vmul.f32 %v496_v44, %v476_v37  ;;  %v636_v37 = vld [vmem:[%s2931_s0 + $0x8] sm:$0xff] }
 0xd54   :  { %1948 = vmatpush.xpose.msk.msrb.mxu2 %vm160_vm5, %v636_v37  ;;  %719 = vmatpush.msra.mxu3 %v636_v37  ;;  %v2469_v37 = vld [vmem:[%s2910_s12 + $0x18] sm:$0xff] }
 0xd55   :  { %v500_v46 = vrot.slane %v498_v45, 4 }
 0xd56   :  { %720 = vmatpush.msra.mxu3 %v635_v38 }
 0xd57   :  { %501 = vrot.lane.b32.xlu2 %v500_v46, %s2182_s4 }
 0xd58   :  { %1949 = vmatpush.xpose.msk.msrb.mxu2 %vm160_vm5, %v635_v38  ;;  %v2475_v38 = vld [vmem:[%s2910_s12 + $0x10] sm:$0xff] }
 0xdb1   :  { %v502_v48 = vpop.permute.xlu2 %501 }
 0xdb2   :  { %1944 = vmatmul.msk.f32.vlgmr.msrb.gmra.mxu3 %vm160_vm5, %v502_v48  ;;  %v675_v48 = vlaneseq }
 0xdb3   :  { %912 = vmatpush.msrb.mxu3 %v2469_v37 }
 0xdb4   :  { %v2395_v49 = vand.u32 127, %v675_v48  ;;  %v2524_v48 = vld [vmem:[%s2911_s8 + $0x28] sm:$0xff] }
 0xdb5   :  { %913 = vmatpush.msrb.mxu3 %v2475_v38 }
 0xe35   :  { %v522_v51 = vpop.f32.mrf.mxu3 }
 0xe36   :  { %v525_v52 = vadd.f32 %v522_v51, %v114_v50 }
 0xe38   :  { %2059 = vtanh.f32 %v525_v52  ;;  %v1945_v54 = vmul.f32 -1.442695, %v525_v52 }
 0xe3a   :  { %2061 = vpow2.f32 %v1945_v54 }
 0xe3e   :  { %v2060_v53 = vpop.eup %2059 }
 0xe3f   :  { %551 = vrot.lane.b32.xlu0 %v2060_v53, %s2181_s28 }
 0xe40   :  { %v2062_v55 = vpop.eup %2061 }
 0xe41   :  { %v529_v56 = vadd.f32 1.0, %v2062_v55 }
 0xe43   :  { %2063 = vrcp.f32 %v529_v56  ;;  %v541_v62 = vand.u32 2147483648, %v529_v56  ;;  %vm535_vm12 = vweird.f32 %v529_v56  ;;  %v539_v2 = vand.u32 2147483647, %v529_v56 }
 0xe45   :  { %v542_v0 = vor.u32 1.1754944e-38, %v541_v62  ;;  %vm540_vm14 = vcmp.eq.f32.partialorder %v539_v2, 8.507059e+37  ;;  %v774_v62 = vld [vmem:[%s2904_s6] sm:$0xff] }
 0xe49   :  { %v2064_v57 = vpop.eup %2063 }
 0xe4a   :  { %v531_v58 = vmul.f32 %v2064_v57, %v529_v56  ;;  %vm536_vm0 = vweird.f32 %v2064_v57 }
 0xe4b   :  { %vm537_vm13 = vmor %vm535_vm12, %vm536_vm0 }
 0xe4c   :  { %v532_v59 = vsub.f32 1.0, %v531_v58 }
 0xe4e   :  { %v533_v60 = vmul.f32 %v2064_v57, %v532_v59  ;;  %v777_v59 = vld [vmem:[%s2904_s6 + $0x18] sm:$0xff] }
 0xe4f   :  { %797 = vmatpush.msra.mxu1 %v777_v59 }
 0xe50   :  { %v534_v61 = vadd.f32 %v2064_v57, %v533_v60  ;;  %v776_v60 = vld [vmem:[%s2904_s6 + $0x10] sm:$0xff] }
 0xe51   :  { %798 = vmatpush.msra.mxu1 %v776_v60 }
 0xe52   :  { %v538_v63 = vsel %vm537_vm13, %v2064_v57, %v534_v61  ;;  %v775_v61 = vld [vmem:[%s2904_s6 + $0x8] sm:$0xff]  ;;  %vm927_vm13 = vcmask 523264  }
 0xe53   :  { %v543_v3 = vsel %vm540_vm14, %v542_v0, %v538_v63  ;;  %799 = vmatpush.msra.mxu1 %v775_v61  ;;  %v2006_v61 = vld [vmem:[%s2906_s9] ss:$0 sm:$0xff] }
 0xe54   :  { %v549_v6 = vmul.f32 %v547_v5, %v543_v3 }
 0xe55   :  { %800 = vmatpush.msra.mxu1 %v774_v62 }
 0xeb1   :  { %v552_v1 = vpop.permute.xlu0 %551 }
 0xeb2   :  { %v554_v4 = vmul.f32 %v552_v1, %v543_v3 }
 0xeb4   :  { %556 = vrot.lane.b32.xlu1 %v554_v4, %s2182_s4  ;;  %v2183_v4 = vmov 0.0  }
 0xf26   :  { %v557_v7 = vpop.permute.xlu1 %556 }
 0xf27   :  { %v559_v8 = vadd.f32 %v557_v7, %v549_v6  ;;  %v2005_v7 = vld [vmem:[%s2905_s7] ss:$0 sm:$0xff] }
 0xf29   :  { %2065 = vtanh.f32 %v559_v8  ;;  %v616_v32 = vrot.slane %v559_v8, 4 }
 0xf2f   :  { %v2066_v9 = vpop.eup %2065 }
 0xf30   :  { %562 = vrot.lane.b32.xlu2 %v2066_v9, %s2181_s28 }
 0xf8a   :  { %v563_v10 = vpop.permute.xlu2 %562 }
 0xf8b   :  { %v565_v11 = vmul.f32 %v563_v10, %v543_v3 }
 0xf8d   :  { %567 = vrot.lane.b32.xlu0 %v565_v11, %s2182_s4 }
 0xfff   :  { %v568_v12 = vpop.permute.xlu0 %567 }
0x1000   :  { %1946 = vmatmul.msk.f32.vlgmr.msrb.gmra.mxu1 %vm160_vm5, %v568_v12 }
0x107d   :  { %v588_v13 = vpop.f32.mrf.mxu1 }
0x107e   :  { %v592_v14 = vrot.slane %v588_v13, 4 }
0x1080   :  { %v594_v15 = vadd.f32 %v592_v14, %v114_v50 }
0x1082   :  { %2067 = vtanh.f32 %v594_v15  ;;  %v1947_v17 = vmul.f32 -1.442695, %v594_v15 }
0x1084   :  { %2069 = vpow2.f32 %v1947_v17 }
0x1088   :  { %v2068_v16 = vpop.eup %2067 }
0x1089   :  { %620 = vrot.lane.b32.xlu1 %v2068_v16, %s2181_s28 }
0x108a   :  { %v2070_v18 = vpop.eup %2069 }
0x108b   :  { %v598_v19 = vadd.f32 1.0, %v2070_v18 }
0x108d   :  { %2071 = vrcp.f32 %v598_v19  ;;  %v610_v25 = vand.u32 2147483648, %v598_v19  ;;  %vm604_vm1 = vweird.f32 %v598_v19  ;;  %v608_v26 = vand.u32 2147483647, %v598_v19 }
0x108f   :  { %v611_v28 = vor.u32 1.1754944e-38, %v610_v25  ;;  %vm609_vm3 = vcmp.eq.f32.partialorder %v608_v26, 8.507059e+37 }
0x1093   :  { %v2072_v20 = vpop.eup %2071 }
0x1094   :  { %v600_v21 = vmul.f32 %v2072_v20, %v598_v19  ;;  %vm605_vm15 = vweird.f32 %v2072_v20 }
0x1095   :  { %vm606_vm2 = vmor %vm604_vm1, %vm605_vm15 }
0x1096   :  { %v601_v22 = vsub.f32 1.0, %v600_v21 }
0x1098   :  { %v602_v23 = vmul.f32 %v2072_v20, %v601_v22 }
0x109a   :  { %v603_v24 = vadd.f32 %v2072_v20, %v602_v23 }
0x109c   :  { %v607_v27 = vsel %vm606_vm2, %v2072_v20, %v603_v24 }
0x109d   :  { %v612_v30 = vsel %vm609_vm3, %v611_v28, %v607_v27 }
0x109e   :  { %v618_v33 = vmul.f32 %v616_v32, %v612_v30  ;;  %v2448_v32 = vld [vmem:[%s2908_s10 + $0x8] sm:$0xff] }
0x10fb   :  { %v621_v29 = vpop.permute.xlu1 %620 }
0x10fc   :  { %v623_v31 = vmul.f32 %v621_v29, %v612_v30 }
0x10fe   :  { %625 = vrot.lane.b32.xlu2 %v623_v31, %s2182_s4  ;;  %v2441_v31 = vld [vmem:[%s2908_s10 + $0x10] sm:$0xff] }
0x1158   :  { %v626_v34 = vpop.permute.xlu2 %625 }
0x1159   :  { %v628_v35 = vadd.f32 %v626_v34, %v618_v33  ;;  %v2455_v33 = vld [vmem:[%s2908_s10] sm:$0xff] }
0x115b   :  { %2073 = vtanh.f32 %v628_v35 }
0x1161   :  { %v2074_v36 = vpop.eup %2073 }
0x1162   :  { %631 = vrot.lane.b32.xlu0 %v2074_v36, %s2181_s28 }
0x11d4   :  { %v632_v39 = vpop.permute.xlu0 %631 }
0x11d5   :  { %v634_v40 = vmul.f32 %v632_v39, %v612_v30  ;;  %v2436_v30 = vld [vmem:[%s2908_s10 + $0x18] sm:$0xff]  ;;  %v2481_v39 = vld [vmem:[%s2910_s12 + $0x8] sm:$0xff] }
0x11d6   :  { %888 = vmatpush.msra.mxu2 %v2436_v30  ;;  %1006 = vmatpush.msrb.mxu1 %v2436_v30 }
0x11d7   :  { %v638_v41 = vrot.slane %v634_v40, 4  ;;  %v2489_v40 = vld [vmem:[%s2910_s12] sm:$0xff]  ;;  %914 = vmatpush.msrb.mxu3 %v2481_v39 }
0x11d8   :  { %889 = vmatpush.msra.mxu2 %v2441_v31  ;;  %1007 = vmatpush.msrb.mxu1 %v2441_v31 }
0x11d9   :  { %639 = vrot.lane.b32.xlu1 %v638_v41, %s2182_s4  ;;  %915 = vmatpush.msrb.mxu3 %v2489_v40  ;;  %v2505_v41 = vld [vmem:[%s2907_s11] ss:$0 sm:$0xff] }
0x11da   :  { %890 = vmatpush.msra.mxu2 %v2448_v32  ;;  %1008 = vmatpush.msrb.mxu1 %v2448_v32 }
0x11dc   :  { %891 = vmatpush.msra.mxu2 %v2455_v33  ;;  %1009 = vmatpush.msrb.mxu1 %v2455_v33 }
0x124b   :  { %v2387_v42 = vpop.permute.xlu1 %639 }
0x124c   :  { %1950 = vmatmul.msk.f32.vlgmr.msrb.gmra.mxu2 %vm160_vm5, %v2387_v42 }
0x124d   :  { %1030 = vmatpush.msrb.mxu2 %v2469_v37 }
0x124f   :  { %1031 = vmatpush.msrb.mxu2 %v2475_v38 }
0x1251   :  { %1032 = vmatpush.msrb.mxu2 %v2481_v39 }
0x1253   :  { %1033 = vmatpush.msrb.mxu2 %v2489_v40 }
0x12cf   :  { %v666_v44 = vpop.f32.mrf.mxu2 }
0x12d0   :  { %v670_v45 = vmul.f32 2.0, %v666_v44 }
0x12d2   :  { %v674_v46 = vsub.f32 %v2004_v43, %v670_v45 }
0x12d4   :  { %v678_v47 = vsel %vm677_vm4, %v674_v46, inf }
0x12d5   :  { %679 = vmin.xlane.f32.xlu2 %v678_v47  ;;  %v2517_v47 = vld [vmem:[%s2911_s8 + $0x30] sm:$0xff] }
0x1348   :  { %v680_v50 = vpop.xlane.xlu2 %679 }
0x1349   :  { %vm681_vm6 = vcmp.le.f32.partialorder %v674_v46, %v680_v50  ;;  %v2512_v46 = vld [vmem:[%s2911_s8 + $0x38] sm:$0xff]  ;;  %v2531_v50 = vld [vmem:[%s2911_s8 + $0x20] sm:$0xff] }
0x134a   :  { %v682_v51 = vsel %vm681_vm6, %v2395_v49, 16  ;;  %939 = vmatpush.msrb.mxu0 %v2512_v46 }
0x134b   :  { %v683_v52 = vsel %vm677_vm4, %v682_v51, 2147483647  ;;  %v2538_v51 = vld [vmem:[%s2911_s8 + $0x18] sm:$0xff] }
0x134c   :  { %v685_v53 = vshra.s32 %v683_v52, 16  ;;  %v684_v55 = vand.u32 65535, %v683_v52  ;;  %940 = vmatpush.msrb.mxu0 %v2517_v47  ;;  %v2545_v52 = vld [vmem:[%s2911_s8 + $0x10] sm:$0xff] }
0x134e   :  { %v687_v54 = vcvt.s32.f32 %v685_v53  ;;  %v686_v57 = vcvt.s32.f32 %v684_v55  ;;  %941 = vmatpush.msrb.mxu0 %v2524_v48  ;;  %v2552_v53 = vld [vmem:[%s2911_s8 + $0x8] sm:$0xff]  ;;  %v2572_v55 = vld [vmem:[%s2909_s13] ss:$0 sm:$0xff] }
0x1350   :  { %688 = vmin.xlane.f32.xlu0 %v687_v54  ;;  %942 = vmatpush.msrb.mxu0 %v2531_v50 }
0x1352   :  { %943 = vmatpush.msrb.mxu0 %v2538_v51 }
0x1354   :  { %944 = vmatpush.msrb.mxu0 %v2545_v52 }
0x1356   :  { %945 = vmatpush.msrb.mxu0 %v2552_v53 }
0x13c3   :  { %v689_v56 = vpop.xlane.xlu0 %688 }
0x13c4   :  { %vm690_vm7 = vcmp.eq.f32.partialorder %v687_v54, %v689_v56  ;;  %v695_v2 = vcvt.f32.s32 %v689_v56  ;;  %v2559_v54 = vld [vmem:[%s2911_s8] sm:$0xff] }
0x13c5   :  { %v691_v58 = vsel %vm690_vm7, %v686_v57, inf  ;;  %946 = vmatpush.msrb.mxu0 %v2559_v54 }
0x13c6   :  { %692 = vmin.xlane.f32.xlu1 %v691_v58  ;;  %v696_v0 = vshll.u32 %v695_v2, 16 }
0x13c7   :  { %1240 = vmatpush.msra.mxu0 %v2436_v30 }
0x13c9   :  { %1241 = vmatpush.msra.mxu0 %v2441_v31 }
0x13cb   :  { %1242 = vmatpush.msra.mxu0 %v2448_v32 }
0x13cd   :  { %1243 = vmatpush.msra.mxu0 %v2455_v33 }
0x1439   :  { %v693_v63 = vpop.xlane.xlu1 %692 }
0x143a   :  { %v694_v1 = vcvt.f32.s32 %v693_v63 }
0x143c   :  { %v697_v3 = vadd.s32 %v696_v0, %v694_v1 }
0x143e   :  { %vm698_vm9 = vcmp.eq.s32.totalorder %v2395_v49, %v697_v3 }
0x143f   :  { %v2412_v5 = vsel %vm698_vm9, 1.0, %v2183_v4 }
0x1440   :  { %1952 = vmatmul.msk.f32.vlgmr.msra.gmra.mxu3 %vm701_vm8, %v2412_v5 }
0x1441   :  { %1056 = vmatpush.msra.mxu3 %v2512_v46 }
0x1443   :  { %1057 = vmatpush.msra.mxu3 %v2517_v47 }
0x1445   :  { %1058 = vmatpush.msra.mxu3 %v2524_v48 }
0x1447   :  { %1059 = vmatpush.msra.mxu3 %v2531_v50 }
0x1449   :  { %1060 = vmatpush.msra.mxu3 %v2538_v51 }
0x144b   :  { %1061 = vmatpush.msra.mxu3 %v2545_v52 }
0x144d   :  { %1062 = vmatpush.msra.mxu3 %v2552_v53 }
0x144f   :  { %1063 = vmatpush.msra.mxu3 %v2559_v54 }
0x14c3   :  { %v2416_v6 = vpop.f32.mrf.mxu3 }
0x14c4   :  { %1953 = vmatmul.msk.f32.vlgmr.msra.gmra.mxu1 %vm160_vm5, %v2416_v6 }
0x14c5   :  { %1147 = vmatpush.msra.mxu1 %v2469_v37 }
0x14c7   :  { %1148 = vmatpush.msra.mxu1 %v2475_v38 }
0x14c9   :  { %1149 = vmatpush.msra.mxu1 %v2481_v39 }
0x14cb   :  { %1150 = vmatpush.msra.mxu1 %v2489_v40 }
0x1541   :  { %v802_v8 = vpop.f32.mrf.mxu1 }
0x1542   :  { %v2423_v9 = vadd.f32 %v2005_v7, %v802_v8 }
0x1544   :  { %2075 = vtanh.f32 %v2423_v9  ;;  %v1954_v11 = vmul.f32 -1.442695, %v2423_v9  ;;  %v2598_v62 = vadd.f32 %v2006_v61, %v2423_v9 }
0x1546   :  { %2077 = vpow2.f32 %v1954_v11 }
0x154a   :  { %v2076_v10 = vpop.eup %2075 }
0x154b   :  { %856 = vrot.lane.b32.xlu2 %v2076_v10, %s2181_s28 }
0x154c   :  { %v2078_v12 = vpop.eup %2077 }
0x154d   :  { %v837_v13 = vadd.f32 1.0, %v2078_v12 }
0x154f   :  { %2079 = vrcp.f32 %v837_v13  ;;  %v849_v19 = vand.u32 2147483648, %v837_v13  ;;  %vm843_vm11 = vweird.f32 %v837_v13  ;;  %v847_v20 = vand.u32 2147483647, %v837_v13 }
0x1551   :  { %v850_v22 = vor.u32 1.1754944e-38, %v849_v19  ;;  %vm848_vm12 = vcmp.eq.f32.partialorder %v847_v20, 8.507059e+37 }
0x1555   :  { %v2080_v14 = vpop.eup %2079 }
0x1556   :  { %v839_v15 = vmul.f32 %v2080_v14, %v837_v13  ;;  %vm844_vm10 = vweird.f32 %v2080_v14 }
0x1557   :  { %vm845_vm0 = vmor %vm843_vm11, %vm844_vm10 }
0x1558   :  { %v840_v16 = vsub.f32 1.0, %v839_v15 }
0x155a   :  { %v841_v17 = vmul.f32 %v2080_v14, %v840_v16 }
0x155c   :  { %v842_v18 = vadd.f32 %v2080_v14, %v841_v17 }
0x155e   :  { %v846_v21 = vsel %vm845_vm0, %v2080_v14, %v842_v18 }
0x155f   :  { %v851_v24 = vsel %vm848_vm12, %v850_v22, %v846_v21 }
0x1560   :  { %v854_v26 = vmul.f32 0.0, %v851_v24 }
0x15a5   :  { %v857_v23 = vpop.permute.xlu2 %856 }
0x15a6   :  { %v859_v25 = vmul.f32 %v857_v23, %v851_v24 }
0x15a8   :  { %861 = vrot.lane.b32.xlu0 %v859_v25, %s2182_s4 }
0x161a   :  { %v862_v27 = vpop.permute.xlu0 %861 }
0x161b   :  { %v2429_v28 = vadd.f32 %v862_v27, %v854_v26 }
0x161d   :  { %2081 = vtanh.f32 %v2429_v28 }
0x1623   :  { %v2082_v29 = vpop.eup %2081 }
0x1624   :  { %867 = vrot.lane.b32.xlu1 %v2082_v29, %s2181_s28 }
0x1696   :  { %v868_v34 = vpop.permute.xlu1 %867 }
0x1697   :  { %v870_v35 = vmul.f32 %v868_v34, %v851_v24 }
0x1699   :  { %872 = vrot.lane.b32.xlu2 %v870_v35, %s2182_s4 }
0x16f3   :  { %v2462_v36 = vpop.permute.xlu2 %872 }
0x16f4   :  { %1955 = vmatmul.msk.f32.vlgmr.msra.gmra.mxu2 %vm160_vm5, %v2462_v36 }
0x16f5   :  { %1123 = vmatpush.msra.mxu2 %v2436_v30 }
0x16f7   :  { %1124 = vmatpush.msra.mxu2 %v2441_v31 }
0x16f9   :  { %1125 = vmatpush.msra.mxu2 %v2448_v32 }
0x16fb   :  { %1126 = vmatpush.msra.mxu2 %v2455_v33 }
0x1777   :  { %v893_v43 = vpop.f32.mrf.mxu2 }
0x1778   :  { %v894_v44 = vadd.f32 %v2505_v41, %v893_v43 }
0x177a   :  { %2083 = vtanh.f32 %v894_v44 }
0x1780   :  { %v2084_v45 = vpop.eup %2083 }
0x1781   :  { %1956 = vmatmul.msk.f32.vlgmr.msrb.gmra.mxu3 %vm160_vm5, %v2084_v45 }
0x1782   :  { %1290 = vmatpush.msrb.mxu3 %v2512_v46 }
0x1784   :  { %1291 = vmatpush.msrb.mxu3 %v2517_v47 }
0x1786   :  { %1292 = vmatpush.msrb.mxu3 %v2524_v48 }
0x1788   :  { %1293 = vmatpush.msrb.mxu3 %v2531_v50 }
0x178a   :  { %1294 = vmatpush.msrb.mxu3 %v2538_v51 }
0x178c   :  { %1295 = vmatpush.msrb.mxu3 %v2545_v52 }
0x178e   :  { %1296 = vmatpush.msrb.mxu3 %v2552_v53 }
0x1790   :  { %1297 = vmatpush.msrb.mxu3 %v2559_v54 }
0x1804   :  { %v917_v56 = vpop.f32.mrf.mxu3 }
0x1805   :  { %v918_v57 = vadd.f32 %v2572_v55, %v917_v56 }
0x1807   :  { %2085 = vtanh.f32 %v918_v57 }
0x180d   :  { %v2583_v58 = vpop.eup %2085 }
0x180e   :  { %923 = vrot.lane.b32.xlu0 %v2583_v58, %s2182_s4 }
0x1880   :  { %v924_v59 = vpop.permute.xlu0 %923 }
0x1881   :  { %v926_v60 = vsel %vm160_vm5, %v2462_v36, %v924_v59 }
0x1882   :  { %1957 = vmatmul.msk.f32.vlgmr.msrb.gmra.mxu0 %vm927_vm13, %v926_v60 }
0x1883   :  { %1357 = vmatpush.msrb.mxu0 %v2436_v30 }
0x1885   :  { %1358 = vmatpush.msrb.mxu0 %v2441_v31 }
0x1887   :  { %1359 = vmatpush.msrb.mxu0 %v2448_v32 }
0x1889   :  { %1360 = vmatpush.msrb.mxu0 %v2455_v33 }
0x18ff   :  { %v948_v2 = vpop.f32.mrf.mxu0 }
0x1900   :  { %v951_v63 = vadd.f32 %v948_v2, %v2598_v62 }
0x1902   :  { %2087 = vtanh.f32 %v951_v63  ;;  %v1958_v1 = vmul.f32 -1.442695, %v951_v63 }
0x1904   :  { %2089 = vpow2.f32 %v1958_v1 }
0x1908   :  { %v2088_v0 = vpop.eup %2087 }
0x1909   :  { %974 = vrot.lane.b32.xlu2 %v2088_v0, %s2181_s28 }
0x190a   :  { %v2090_v3 = vpop.eup %2089 }
0x190b   :  { %v955_v4 = vadd.f32 1.0, %v2090_v3 }
0x190d   :  { %2091 = vrcp.f32 %v955_v4  ;;  %v967_v9 = vand.u32 2147483648, %v955_v4  ;;  %vm961_vm15 = vweird.f32 %v955_v4  ;;  %v965_v13 = vand.u32 2147483647, %v955_v4 }
0x190f   :  { %v968_v15 = vor.u32 1.1754944e-38, %v967_v9  ;;  %vm966_vm2 = vcmp.eq.f32.partialorder %v965_v13, 8.507059e+37 }
0x1913   :  { %v2092_v7 = vpop.eup %2091 }
0x1914   :  { %v957_v8 = vmul.f32 %v2092_v7, %v955_v4  ;;  %vm962_vm14 = vweird.f32 %v2092_v7 }
0x1915   :  { %vm963_vm1 = vmor %vm961_vm15, %vm962_vm14 }
0x1916   :  { %v958_v10 = vsub.f32 1.0, %v957_v8 }
0x1918   :  { %v959_v11 = vmul.f32 %v2092_v7, %v958_v10 }
0x191a   :  { %v960_v12 = vadd.f32 %v2092_v7, %v959_v11 }
0x191c   :  { %v964_v14 = vsel %vm963_vm1, %v2092_v7, %v960_v12 }
0x191d   :  { %v969_v17 = vsel %vm966_vm2, %v968_v15, %v964_v14 }
0x191e   :  { %v972_v19 = vmul.f32 %v969_v17, %v2429_v28 }
0x1963   :  { %v975_v16 = vpop.permute.xlu2 %974 }
0x1964   :  { %v977_v18 = vmul.f32 %v975_v16, %v969_v17 }
0x1966   :  { %979 = vrot.lane.b32.xlu1 %v977_v18, %s2182_s4 }
0x19d8   :  { %v980_v20 = vpop.permute.xlu1 %979 }
0x19d9   :  { %v2604_v21 = vadd.f32 %v980_v20, %v972_v19 }
0x19db   :  { %2093 = vtanh.f32 %v2604_v21 }
0x19e1   :  { %v2094_v22 = vpop.eup %2093 }
0x19e2   :  { %985 = vrot.lane.b32.xlu0 %v2094_v22, %s2181_s28 }
0x1a54   :  { %v986_v23 = vpop.permute.xlu0 %985 }
0x1a55   :  { %v988_v24 = vmul.f32 %v986_v23, %v969_v17 }
0x1a57   :  { %990 = vrot.lane.b32.xlu2 %v988_v24, %s2182_s4 }
0x1ab1   :  { %v991_v25 = vpop.permute.xlu2 %990 }
0x1ab2   :  { %1959 = vmatmul.msk.f32.vlgmr.msrb.gmra.mxu1 %vm160_vm5, %v991_v25 }
0x1ab3   :  { %1264 = vmatpush.msrb.mxu1 %v2469_v37 }
0x1ab5   :  { %1265 = vmatpush.msrb.mxu1 %v2475_v38 }
0x1ab7   :  { %1266 = vmatpush.msrb.mxu1 %v2481_v39 }
0x1ab9   :  { %1267 = vmatpush.msrb.mxu1 %v2489_v40 }
0x1b2f   :  { %v1011_v26 = vpop.f32.mrf.mxu1 }
0x1b30   :  { %v1012_v27 = vadd.f32 %v2505_v41, %v1011_v26 }
0x1b32   :  { %2095 = vtanh.f32 %v1012_v27 }
0x1b38   :  { %v2096_v28 = vpop.eup %2095 }
0x1b39   :  { %1960 = vmatmul.msk.f32.vlgmr.msrb.gmra.mxu2 %vm160_vm5, %v2096_v28 }
0x1b3a   :  { %1173 = vmatpush.msrb.mxu2 %v2512_v46 }
0x1b3c   :  { %1174 = vmatpush.msrb.mxu2 %v2517_v47 }
0x1b3e   :  { %1175 = vmatpush.msrb.mxu2 %v2524_v48 }
0x1b40   :  { %1176 = vmatpush.msrb.mxu2 %v2531_v50 }
0x1b42   :  { %1177 = vmatpush.msrb.mxu2 %v2538_v51 }
0x1b44   :  { %1178 = vmatpush.msrb.mxu2 %v2545_v52 }
0x1b46   :  { %1179 = vmatpush.msrb.mxu2 %v2552_v53 }
0x1b48   :  { %1180 = vmatpush.msrb.mxu2 %v2559_v54 }
0x1bbc   :  { %v1035_v29 = vpop.f32.mrf.mxu2 }
0x1bbd   :  { %v1036_v34 = vadd.f32 %v2572_v55, %v1035_v29 }
0x1bbf   :  { %2097 = vtanh.f32 %v1036_v34 }
0x1bc5   :  { %v2625_v35 = vpop.eup %2097 }
0x1bc6   :  { %1041 = vrot.lane.b32.xlu1 %v2625_v35, %s2182_s4 }
0x1c38   :  { %v1042_v36 = vpop.permute.xlu1 %1041 }
0x1c39   :  { %v1044_v43 = vsel %vm160_vm5, %v991_v25, %v1042_v36 }
0x1c3a   :  { %1961 = vmatmul.msk.f32.vlgmr.msra.gmra.mxu3 %vm927_vm13, %v1044_v43 }
0x1c3b   :  { %1524 = vmatpush.msra.mxu3 %v2512_v46 }
0x1c3d   :  { %1525 = vmatpush.msra.mxu3 %v2517_v47 }
0x1c3f   :  { %1526 = vmatpush.msra.mxu3 %v2524_v48 }
0x1c41   :  { %1527 = vmatpush.msra.mxu3 %v2531_v50 }
0x1c43   :  { %1528 = vmatpush.msra.mxu3 %v2538_v51 }
0x1c45   :  { %1529 = vmatpush.msra.mxu3 %v2545_v52 }
0x1c47   :  { %1530 = vmatpush.msra.mxu3 %v2552_v53 }
0x1c49   :  { %1531 = vmatpush.msra.mxu3 %v2559_v54 }
0x1cbd   :  { %v1065_v44 = vpop.f32.mrf.mxu3 }
0x1cbe   :  { %v1068_v45 = vadd.f32 %v1065_v44, %v2598_v62 }
0x1cc0   :  { %2099 = vtanh.f32 %v1068_v45  ;;  %v1962_v57 = vmul.f32 -1.442695, %v1068_v45 }
0x1cc2   :  { %2101 = vpow2.f32 %v1962_v57 }
0x1cc6   :  { %v2100_v56 = vpop.eup %2099 }
0x1cc7   :  { %1091 = vrot.lane.b32.xlu0 %v2100_v56, %s2181_s28 }
0x1cc8   :  { %v2102_v59 = vpop.eup %2101 }
0x1cc9   :  { %v1072_v60 = vadd.f32 1.0, %v2102_v59 }
0x1ccb   :  { %2103 = vrcp.f32 %v1072_v60  ;;  %v1084_v3 = vand.u32 2147483648, %v1072_v60  ;;  %vm1078_vm6 = vweird.f32 %v1072_v60  ;;  %v1082_v4 = vand.u32 2147483647, %v1072_v60 }
0x1ccd   :  { %v1085_v8 = vor.u32 1.1754944e-38, %v1084_v3  ;;  %vm1083_vm9 = vcmp.eq.f32.partialorder %v1082_v4, 8.507059e+37 }
0x1cd1   :  { %v2104_v61 = vpop.eup %2103 }
0x1cd2   :  { %v1074_v2 = vmul.f32 %v2104_v61, %v1072_v60  ;;  %vm1079_vm3 = vweird.f32 %v2104_v61 }
0x1cd3   :  { %vm1080_vm7 = vmor %vm1078_vm6, %vm1079_vm3 }
0x1cd4   :  { %v1075_v63 = vsub.f32 1.0, %v1074_v2 }
0x1cd6   :  { %v1076_v0 = vmul.f32 %v2104_v61, %v1075_v63 }
0x1cd8   :  { %v1077_v1 = vadd.f32 %v2104_v61, %v1076_v0 }
0x1cda   :  { %v1081_v7 = vsel %vm1080_vm7, %v2104_v61, %v1077_v1 }
0x1cdb   :  { %v1086_v11 = vsel %vm1083_vm9, %v1085_v8, %v1081_v7 }
0x1cdc   :  { %v1089_v9 = vmul.f32 %v1086_v11, %v2604_v21 }
0x1d39   :  { %v1092_v10 = vpop.permute.xlu0 %1091 }
0x1d3a   :  { %v1094_v12 = vmul.f32 %v1092_v10, %v1086_v11 }
0x1d3c   :  { %1096 = vrot.lane.b32.xlu2 %v1094_v12, %s2182_s4 }
0x1d96   :  { %v1097_v13 = vpop.permute.xlu2 %1096 }
0x1d97   :  { %v2643_v14 = vadd.f32 %v1097_v13, %v1089_v9 }
0x1d99   :  { %2105 = vtanh.f32 %v2643_v14 }
0x1d9f   :  { %v2106_v15 = vpop.eup %2105 }
0x1da0   :  { %1102 = vrot.lane.b32.xlu1 %v2106_v15, %s2181_s28 }
0x1e12   :  { %v1103_v16 = vpop.permute.xlu1 %1102 }
0x1e13   :  { %v1105_v17 = vmul.f32 %v1103_v16, %v1086_v11 }
0x1e15   :  { %1107 = vrot.lane.b32.xlu0 %v1105_v17, %s2182_s4 }
0x1e87   :  { %v1108_v18 = vpop.permute.xlu0 %1107 }
0x1e88   :  { %1963 = vmatmul.msk.f32.vlgmr.msra.gmra.mxu2 %vm160_vm5, %v1108_v18 }
0x1e89   :  { %1407 = vmatpush.msra.mxu2 %v2512_v46 }
0x1e8b   :  { %1408 = vmatpush.msra.mxu2 %v2517_v47 }
0x1e8d   :  { %1409 = vmatpush.msra.mxu2 %v2524_v48 }
0x1e8f   :  { %1410 = vmatpush.msra.mxu2 %v2531_v50 }
0x1e91   :  { %1411 = vmatpush.msra.mxu2 %v2538_v51 }
0x1e93   :  { %1412 = vmatpush.msra.mxu2 %v2545_v52 }
0x1e95   :  { %1413 = vmatpush.msra.mxu2 %v2552_v53 }
0x1e97   :  { %1414 = vmatpush.msra.mxu2 %v2559_v54 }
0x1f0b   :  { %v1128_v19 = vpop.f32.mrf.mxu2 }
0x1f0c   :  { %v1129_v20 = vadd.f32 %v2505_v41, %v1128_v19 }
0x1f0e   :  { %2107 = vtanh.f32 %v1129_v20 }
0x1f14   :  { %v2108_v21 = vpop.eup %2107 }
0x1f15   :  { %1964 = vmatmul.msk.f32.vlgmr.msra.gmra.mxu1 %vm160_vm5, %v2108_v21 }
0x1f16   :  { %1381 = vmatpush.msra.mxu1 %v2469_v37 }
0x1f18   :  { %1382 = vmatpush.msra.mxu1 %v2475_v38 }
0x1f1a   :  { %1383 = vmatpush.msra.mxu1 %v2481_v39 }
0x1f1c   :  { %1384 = vmatpush.msra.mxu1 %v2489_v40 }
0x1f92   :  { %v1152_v22 = vpop.f32.mrf.mxu1 }
0x1f93   :  { %v1153_v23 = vadd.f32 %v2572_v55, %v1152_v22 }
0x1f95   :  { %2109 = vtanh.f32 %v1153_v23 }
0x1f9b   :  { %v2664_v24 = vpop.eup %2109 }
0x1f9c   :  { %1158 = vrot.lane.b32.xlu2 %v2664_v24, %s2182_s4 }
0x1ff6   :  { %v1159_v25 = vpop.permute.xlu2 %1158 }
0x1ff7   :  { %v1161_v26 = vsel %vm160_vm5, %v1108_v18, %v1159_v25 }
0x1ff8   :  { %1965 = vmatmul.msk.f32.vlgmr.msrb.gmra.mxu2 %vm927_vm13, %v1161_v26 }
0x1ff9   :  { %1641 = vmatpush.msrb.mxu2 %v2512_v46 }
0x1ffb   :  { %1642 = vmatpush.msrb.mxu2 %v2517_v47 }
0x1ffd   :  { %1643 = vmatpush.msrb.mxu2 %v2524_v48 }
0x1fff   :  { %1644 = vmatpush.msrb.mxu2 %v2531_v50 }
0x2001   :  { %1645 = vmatpush.msrb.mxu2 %v2538_v51 }
0x2003   :  { %1646 = vmatpush.msrb.mxu2 %v2545_v52 }
0x2005   :  { %1647 = vmatpush.msrb.mxu2 %v2552_v53 }
0x2007   :  { %1648 = vmatpush.msrb.mxu2 %v2559_v54 }
0x207b   :  { %v1182_v27 = vpop.f32.mrf.mxu2 }
0x207c   :  { %v1185_v28 = vadd.f32 %v1182_v27, %v2598_v62 }
0x207e   :  { %2111 = vtanh.f32 %v1185_v28  ;;  %v1966_v46 = vmul.f32 -1.442695, %v1185_v28 }
0x2080   :  { %2113 = vpow2.f32 %v1966_v46 }
0x2084   :  { %v2112_v29 = vpop.eup %2111 }
0x2085   :  { %1208 = vrot.lane.b32.xlu1 %v2112_v29, %s2181_s28 }
0x2086   :  { %v2114_v47 = vpop.eup %2113 }
0x2087   :  { %v1189_v48 = vadd.f32 1.0, %v2114_v47 }
0x2089   :  { %2115 = vrcp.f32 %v1189_v48  ;;  %v1201_v53 = vand.u32 2147483648, %v1189_v48  ;;  %vm1195_vm11 = vweird.f32 %v1189_v48  ;;  %v1199_v54 = vand.u32 2147483647, %v1189_v48 }
0x208b   :  { %v1202_v44 = vor.u32 1.1754944e-38, %v1201_v53  ;;  %vm1200_vm12 = vcmp.eq.f32.partialorder %v1199_v54, 8.507059e+37 }
0x208f   :  { %v2116_v50 = vpop.eup %2115 }
0x2090   :  { %v1191_v51 = vmul.f32 %v2116_v50, %v1189_v48  ;;  %vm1196_vm10 = vweird.f32 %v2116_v50 }
0x2091   :  { %vm1197_vm0 = vmor %vm1195_vm11, %vm1196_vm10  ;;  %vm740_vm10 = vcmask 1043456  }
0x2092   :  { %v1192_v34 = vsub.f32 1.0, %v1191_v51 }
0x2094   :  { %v1193_v52 = vmul.f32 %v2116_v50, %v1192_v34 }
0x2096   :  { %v1194_v36 = vadd.f32 %v2116_v50, %v1193_v52 }
0x2098   :  { %v1198_v43 = vsel %vm1197_vm0, %v2116_v50, %v1194_v36 }
0x2099   :  { %v1203_v56 = vsel %vm1200_vm12, %v1202_v44, %v1198_v43 }
0x209a   :  { %v1206_v59 = vmul.f32 %v1203_v56, %v2643_v14 }
0x20f7   :  { %v1209_v45 = vpop.permute.xlu1 %1208 }
0x20f8   :  { %v1211_v57 = vmul.f32 %v1209_v45, %v1203_v56 }
0x20fa   :  { %1213 = vrot.lane.b32.xlu0 %v1211_v57, %s2182_s4 }
0x216c   :  { %v1214_v60 = vpop.permute.xlu0 %1213 }
0x216d   :  { %v1216_v61 = vadd.f32 %v1214_v60, %v1206_v59 }
0x216f   :  { %2117 = vtanh.f32 %v1216_v61 }
0x2175   :  { %v2118_v2 = vpop.eup %2117 }
0x2176   :  { %1219 = vrot.lane.b32.xlu2 %v2118_v2, %s2181_s28 }
0x21d0   :  { %v1220_v63 = vpop.permute.xlu2 %1219 }
0x21d1   :  { %v1222_v0 = vmul.f32 %v1220_v63, %v1203_v56 }
0x21d3   :  { %1224 = vrot.lane.b32.xlu1 %v1222_v0, %s2182_s4 }
0x2245   :  { %v1225_v1 = vpop.permute.xlu1 %1224 }
0x2246   :  { %1967 = vmatmul.msk.f32.vlgmr.msra.gmra.mxu0 %vm160_vm5, %v1225_v1 }
0x2247   :  { %1474 = vmatpush.msra.mxu0 %v2436_v30 }
0x2249   :  { %1475 = vmatpush.msra.mxu0 %v2441_v31 }
0x224b   :  { %1476 = vmatpush.msra.mxu0 %v2448_v32 }
0x224d   :  { %1477 = vmatpush.msra.mxu0 %v2455_v33 }
0x22c3   :  { %v1245_v3 = vpop.f32.mrf.mxu0 }
0x22c4   :  { %v1246_v4 = vadd.f32 %v2505_v41, %v1245_v3 }
0x22c6   :  { %2119 = vtanh.f32 %v1246_v4 }
0x22cc   :  { %v2120_v7 = vpop.eup %2119 }
0x22cd   :  { %1968 = vmatmul.msk.f32.vlgmr.msrb.gmra.mxu1 %vm160_vm5, %v2120_v7 }
0x22ce   :  { %1498 = vmatpush.msrb.mxu1 %v2469_v37 }
0x22d0   :  { %1499 = vmatpush.msrb.mxu1 %v2475_v38 }
0x22d2   :  { %1500 = vmatpush.msrb.mxu1 %v2481_v39 }
0x22d4   :  { %1501 = vmatpush.msrb.mxu1 %v2489_v40 }
0x234a   :  { %v1269_v8 = vpop.f32.mrf.mxu1 }
0x234b   :  { %v1270_v10 = vadd.f32 %v2572_v55, %v1269_v8 }
0x234d   :  { %2121 = vtanh.f32 %v1270_v10 }
0x2353   :  { %v2696_v11 = vpop.eup %2121 }
0x2354   :  { %1275 = vrot.lane.b32.xlu0 %v2696_v11, %s2182_s4 }
0x23c6   :  { %v1276_v12 = vpop.permute.xlu0 %1275 }
0x23c7   :  { %v1278_v9 = vsel %vm160_vm5, %v1225_v1, %v1276_v12 }
0x23c8   :  { %1969 = vmatmul.msk.f32.vlgmr.msrb.gmra.mxu3 %vm927_vm13, %v1278_v9 }
0x244b   :  { %v1299_v13 = vpop.f32.mrf.mxu3 }
0x244c   :  { %v1302_v14 = vadd.f32 %v1299_v13, %v2598_v62 }
0x244e   :  { %2123 = vtanh.f32 %v1302_v14  ;;  %v1970_v16 = vmul.f32 -1.442695, %v1302_v14 }
0x2450   :  { %2125 = vpow2.f32 %v1970_v16 }
0x2454   :  { %v2124_v15 = vpop.eup %2123 }
0x2455   :  { %1325 = vrot.lane.b32.xlu2 %v2124_v15, %s2181_s28 }
0x2456   :  { %v2126_v17 = vpop.eup %2125 }
0x2457   :  { %v1306_v18 = vadd.f32 1.0, %v2126_v17 }
0x2459   :  { %2127 = vrcp.f32 %v1306_v18  ;;  %v1318_v25 = vand.u32 2147483648, %v1306_v18  ;;  %vm1312_vm15 = vweird.f32 %v1306_v18  ;;  %v1316_v26 = vand.u32 2147483647, %v1306_v18 }
0x245b   :  { %v1319_v28 = vor.u32 1.1754944e-38, %v1318_v25  ;;  %vm1317_vm2 = vcmp.eq.f32.partialorder %v1316_v26, 8.507059e+37 }
0x245f   :  { %v2128_v19 = vpop.eup %2127 }
0x2460   :  { %v1308_v20 = vmul.f32 %v2128_v19, %v1306_v18  ;;  %vm1313_vm14 = vweird.f32 %v2128_v19 }
0x2461   :  { %vm1314_vm1 = vmor %vm1312_vm15, %vm1313_vm14 }
0x2462   :  { %v1309_v21 = vsub.f32 1.0, %v1308_v20 }
0x2464   :  { %v1310_v22 = vmul.f32 %v2128_v19, %v1309_v21 }
0x2466   :  { %v1311_v23 = vadd.f32 %v2128_v19, %v1310_v22 }
0x2468   :  { %v1315_v27 = vsel %vm1314_vm1, %v2128_v19, %v1311_v23 }
0x2469   :  { %v1320_v46 = vsel %vm1317_vm2, %v1319_v28, %v1315_v27 }
0x246a   :  { %v1323_v48 = vmul.f32 %v1320_v46, %v1216_v61 }
0x24af   :  { %v1326_v29 = vpop.permute.xlu2 %1325 }
0x24b0   :  { %v1328_v47 = vmul.f32 %v1326_v29, %v1320_v46 }
0x24b2   :  { %1330 = vrot.lane.b32.xlu1 %v1328_v47, %s2182_s4  ;;  %v1741_v47 = vrot.slane %v2625_v35, 4 }
0x2524   :  { %v1331_v50 = vpop.permute.xlu1 %1330 }
0x2525   :  { %v1333_v51 = vadd.f32 %v1331_v50, %v1323_v48  ;;  %v2763_v48 = vsel %vm740_vm10, %v2583_v58, %v1741_v47  ;;  %v1743_v50 = vrot.slane %v2696_v11, 4 }
0x2527   :  { %2129 = vtanh.f32 %v1333_v51 }
0x252d   :  { %v2130_v34 = vpop.eup %2129 }
0x252e   :  { %1336 = vrot.lane.b32.xlu0 %v2130_v34, %s2181_s28 }
0x25a0   :  { %v1337_v52 = vpop.permute.xlu0 %1336 }
0x25a1   :  { %v1339_v36 = vmul.f32 %v1337_v52, %v1320_v46 }
0x25a3   :  { %1341 = vrot.lane.b32.xlu2 %v1339_v36, %s2182_s4 }
0x25fd   :  { %v1342_v53 = vpop.permute.xlu2 %1341 }
0x25fe   :  { %1971 = vmatmul.msk.f32.vlgmr.msrb.gmra.mxu0 %vm160_vm5, %v1342_v53 }
0x25ff   :  { %1591 = vmatpush.msrb.mxu0 %v2436_v30 }
0x2601   :  { %1592 = vmatpush.msrb.mxu0 %v2441_v31 }
0x2603   :  { %1593 = vmatpush.msrb.mxu0 %v2448_v32 }
0x2605   :  { %1594 = vmatpush.msrb.mxu0 %v2455_v33 }
0x267b   :  { %v1362_v54 = vpop.f32.mrf.mxu0 }
0x267c   :  { %v1363_v43 = vadd.f32 %v2505_v41, %v1362_v54 }
0x267e   :  { %2131 = vtanh.f32 %v1363_v43 }
0x2684   :  { %v2132_v44 = vpop.eup %2131 }
0x2685   :  { %1972 = vmatmul.msk.f32.vlgmr.msra.gmra.mxu1 %vm160_vm5, %v2132_v44 }
0x2686   :  { %1615 = vmatpush.msra.mxu1 %v2469_v37 }
0x2688   :  { %1616 = vmatpush.msra.mxu1 %v2475_v38 }
0x268a   :  { %1617 = vmatpush.msra.mxu1 %v2481_v39 }
0x268c   :  { %1618 = vmatpush.msra.mxu1 %v2489_v40 }
0x2702   :  { %v1386_v45 = vpop.f32.mrf.mxu1 }
0x2703   :  { %v1387_v56 = vadd.f32 %v2572_v55, %v1386_v45 }
0x2705   :  { %2133 = vtanh.f32 %v1387_v56 }
0x270b   :  { %v2719_v57 = vpop.eup %2133 }
0x270c   :  { %1392 = vrot.lane.b32.xlu1 %v2719_v57, %s2182_s4 }
0x277e   :  { %v1393_v59 = vpop.permute.xlu1 %1392 }
0x277f   :  { %v1395_v60 = vsel %vm160_vm5, %v1342_v53, %v1393_v59 }
0x2780   :  { %1973 = vmatmul.msk.f32.vlgmr.msra.gmra.mxu2 %vm927_vm13, %v1395_v60 }
0x2803   :  { %v1416_v61 = vpop.f32.mrf.mxu2 }
0x2804   :  { %v1419_v2 = vadd.f32 %v1416_v61, %v2598_v62 }
0x2806   :  { %2135 = vtanh.f32 %v1419_v2  ;;  %v1974_v0 = vmul.f32 -1.442695, %v1419_v2 }
0x2808   :  { %2137 = vpow2.f32 %v1974_v0 }
0x280c   :  { %v2136_v63 = vpop.eup %2135 }
0x280d   :  { %1442 = vrot.lane.b32.xlu0 %v2136_v63, %s2181_s28 }
0x280e   :  { %v2138_v1 = vpop.eup %2137 }
0x280f   :  { %v1423_v3 = vadd.f32 1.0, %v2138_v1 }
0x2811   :  { %2139 = vrcp.f32 %v1423_v3  ;;  %v1435_v9 = vand.u32 2147483648, %v1423_v3  ;;  %vm1429_vm6 = vweird.f32 %v1423_v3  ;;  %v1433_v13 = vand.u32 2147483647, %v1423_v3 }
0x2813   :  { %v1436_v15 = vor.u32 1.1754944e-38, %v1435_v9  ;;  %vm1434_vm9 = vcmp.eq.f32.partialorder %v1433_v13, 8.507059e+37 }
0x2817   :  { %v2140_v4 = vpop.eup %2139 }
0x2818   :  { %v1425_v7 = vmul.f32 %v2140_v4, %v1423_v3  ;;  %vm1430_vm3 = vweird.f32 %v2140_v4 }
0x2819   :  { %vm1431_vm7 = vmor %vm1429_vm6, %vm1430_vm3  ;;  %vm728_vm3 = vcmask 257024  }
0x281a   :  { %v1426_v8 = vsub.f32 1.0, %v1425_v7 }
0x281c   :  { %v1427_v10 = vmul.f32 %v2140_v4, %v1426_v8 }
0x281e   :  { %v1428_v12 = vadd.f32 %v2140_v4, %v1427_v10 }
0x2820   :  { %v1432_v14 = vsel %vm1431_vm7, %v2140_v4, %v1428_v12  ;;  %vm1893_vm7 = vcmp.eq.s32.totalorder %v2395_v49, 24 }
0x2821   :  { %v1437_v17 = vsel %vm1434_vm9, %v1436_v15, %v1432_v14 }
0x2822   :  { %v1440_v19 = vmul.f32 %v1437_v17, %v1333_v51  ;;  %v2770_v51 = vsel %vm740_vm10, %v2664_v24, %v1743_v50 }
0x287f   :  { %v1443_v16 = vpop.permute.xlu0 %1442 }
0x2880   :  { %v1445_v18 = vmul.f32 %v1443_v16, %v1437_v17 }
0x2882   :  { %1447 = vrot.lane.b32.xlu2 %v1445_v18, %s2182_s4  ;;  %v1898_v18 = vld [vmem:[%s2914_s19 + $0x8] sm:$0xff] }
0x2883   :  { %1913 = vmatpush.msra.mxu2 %v1898_v18 }
0x28dc   :  { %v1448_v20 = vpop.permute.xlu2 %1447 }
0x28dd   :  { %v2728_v21 = vadd.f32 %v1448_v20, %v1440_v19 }
0x28df   :  { %2141 = vtanh.f32 %v2728_v21 }
0x28e5   :  { %v2142_v22 = vpop.eup %2141 }
0x28e6   :  { %1453 = vrot.lane.b32.xlu1 %v2142_v22, %s2181_s28 }
0x2958   :  { %v1454_v23 = vpop.permute.xlu1 %1453 }
0x2959   :  { %v1456_v25 = vmul.f32 %v1454_v23, %v1437_v17 }
0x295b   :  { %1458 = vrot.lane.b32.xlu0 %v1456_v25, %s2182_s4 }
0x29cd   :  { %v1459_v26 = vpop.permute.xlu0 %1458 }
0x29ce   :  { %1975 = vmatmul.msk.f32.vlgmr.msra.gmra.mxu0 %vm160_vm5, %v1459_v26 }
0x29cf   :  { %1708 = vmatpush.msra.mxu0 %v2436_v30 }
0x29d1   :  { %1709 = vmatpush.msra.mxu0 %v2441_v31 }
0x29d3   :  { %1710 = vmatpush.msra.mxu0 %v2448_v32 }
0x29d5   :  { %1711 = vmatpush.msra.mxu0 %v2455_v33  ;;  %v1757_v33 = vld [vmem:[%s2912_s14 + $0x18] sm:$0xff] }
0x29d6   :  { %1786 = vmatpush.msrb.mxu3 %v1757_v33 }
0x2a4b   :  { %v1479_v27 = vpop.f32.mrf.mxu0 }
0x2a4c   :  { %v1480_v28 = vadd.f32 %v2505_v41, %v1479_v27 }
0x2a4e   :  { %2143 = vtanh.f32 %v1480_v28 }
0x2a54   :  { %v2144_v29 = vpop.eup %2143 }
0x2a55   :  { %1976 = vmatmul.msk.f32.vlgmr.msrb.gmra.mxu1 %vm160_vm5, %v2144_v29 }
0x2a56   :  { %1732 = vmatpush.msrb.mxu1 %v2469_v37  ;;  %v1756_v37 = vld [vmem:[%s2912_s14 + $0x10] sm:$0xff] }
0x2a57   :  { %1787 = vmatpush.msrb.mxu3 %v1756_v37 }
0x2a58   :  { %1733 = vmatpush.msrb.mxu1 %v2475_v38  ;;  %v1755_v38 = vld [vmem:[%s2912_s14 + $0x8] sm:$0xff] }
0x2a59   :  { %1788 = vmatpush.msrb.mxu3 %v1755_v38 }
0x2a5a   :  { %1734 = vmatpush.msrb.mxu1 %v2481_v39  ;;  %v1754_v39 = vld [vmem:[%s2912_s14] sm:$0xff] }
0x2a5b   :  { %1789 = vmatpush.msrb.mxu3 %v1754_v39 }
0x2a5c   :  { %1735 = vmatpush.msrb.mxu1 %v2489_v40 }
0x2ad2   :  { %v1503_v30 = vpop.f32.mrf.mxu1 }
0x2ad3   :  { %v1504_v31 = vadd.f32 %v2572_v55, %v1503_v30 }
0x2ad5   :  { %2145 = vtanh.f32 %v1504_v31 }
0x2adb   :  { %v2146_v32 = vpop.eup %2145 }
0x2adc   :  { %1509 = vrot.lane.b32.xlu2 %v2146_v32, %s2182_s4  ;;  %v1745_v34 = vrot.slane %v2146_v32, 4 }
0x2ade   :  { %v2776_v35 = vsel %vm740_vm10, %v2719_v57, %v1745_v34  ;;  %v2184_v34 = vmov 4.0  }
0x2b36   :  { %v1510_v40 = vpop.permute.xlu2 %1509 }
0x2b37   :  { %v1512_v46 = vsel %vm160_vm5, %v1459_v26, %v1510_v40 }
0x2b38   :  { %1977 = vmatmul.msk.f32.vlgmr.msra.gmra.mxu3 %vm927_vm13, %v1512_v46  ;;  %v726_v46 = vsub.f32 %v2416_v6, %v2387_v42 }
0x2b3a   :  { %v727_v47 = vmul.f32 %v726_v46, %v726_v46 }
0x2b3c   :  { %v729_v50 = vsel %vm728_vm3, %v727_v47, 0.0 }
0x2b40   :  { %1985 = vmatmul.msk.f32.vlgmr.msrb.gmra.mxu3 %vm160_vm5, %v2763_v48 }
0x2b48   :  { %1986 = vmatmul.msk.f32.gmra.mxu3 %vm160_vm5, %v2770_v51 }
0x2b50   :  { %1987 = vmatmul.msk.f32.gmra.mxu3 %vm160_vm5, %v2776_v35 }
0x2bbb   :  { %v1533_v58 = vpop.f32.mrf.mxu3 }
0x2bbc   :  { %v1536_v52 = vadd.f32 %v1533_v58, %v2598_v62  ;;  %v756_v58 = vsel %vm677_vm4, %v2412_v5, 0.0 }
0x2bbe   :  { %2147 = vtanh.f32 %v1536_v52  ;;  %v1978_v24 = vmul.f32 -1.442695, %v1536_v52 }
0x2bc0   :  { %2149 = vpow2.f32 %v1978_v24 }
0x2bc4   :  { %v2148_v11 = vpop.eup %2147 }
0x2bc5   :  { %1559 = vrot.lane.b32.xlu1 %v2148_v11, %s2181_s28 }
0x2bc6   :  { %v2150_v36 = vpop.eup %2149 }
0x2bc7   :  { %v1540_v53 = vadd.f32 1.0, %v2150_v36  ;;  %v757_v36 = vrot.slane %v756_v58, 4 }
0x2bc9   :  { %2151 = vrcp.f32 %v1540_v53  ;;  %v1552_v57 = vand.u32 2147483648, %v1540_v53  ;;  %vm1546_vm0 = vweird.f32 %v1540_v53  ;;  %v1550_v59 = vand.u32 2147483647, %v1540_v53 }
0x2bcb   :  { %v1553_v61 = vor.u32 1.1754944e-38, %v1552_v57  ;;  %vm1551_vm14 = vcmp.eq.f32.partialorder %v1550_v59, 8.507059e+37 }
0x2bcf   :  { %v2152_v54 = vpop.eup %2151 }
0x2bd0   :  { %v1542_v43 = vmul.f32 %v2152_v54, %v1540_v53  ;;  %vm1547_vm11 = vweird.f32 %v2152_v54 }
0x2bd1   :  { %vm1548_vm12 = vmor %vm1546_vm0, %vm1547_vm11 }
0x2bd2   :  { %v1543_v44 = vsub.f32 1.0, %v1542_v43 }
0x2bd4   :  { %v1544_v45 = vmul.f32 %v2152_v54, %v1543_v44 }
0x2bd6   :  { %v1545_v56 = vadd.f32 %v2152_v54, %v1544_v45 }
0x2bd8   :  { %v1549_v60 = vsel %vm1548_vm12, %v2152_v54, %v1545_v56  ;;  %v758_v54 = vadd.f32 %v757_v36, %v756_v58 }
0x2bd9   :  { %v1554_v63 = vsel %vm1551_vm14, %v1553_v61, %v1549_v60 }
0x2bda   :  { %v1557_v1 = vmul.f32 %v1554_v63, %v2728_v21  ;;  %v759_v42 = vrot.slane %v758_v54, 2 }
0x2bdc   :  { %v760_v45 = vadd.f32 %v759_v42, %v758_v54 }
0x2bde   :  { %v761_v57 = vrot.slane %v760_v45, 1 }
0x2c37   :  { %v1560_v2 = vpop.permute.xlu1 %1559 }
0x2c38   :  { %v1562_v0 = vmul.f32 %v1560_v2, %v1554_v63 }
0x2c3a   :  { %1564 = vrot.lane.b32.xlu0 %v1562_v0, %s2182_s4 }
0x2cac   :  { %v1565_v3 = vpop.permute.xlu0 %1564 }
0x2cad   :  { %v2784_v4 = vadd.f32 %v1565_v3, %v1557_v1 }
0x2caf   :  { %2153 = vtanh.f32 %v2784_v4 }
0x2cb5   :  { %v2154_v7 = vpop.eup %2153 }
0x2cb6   :  { %1570 = vrot.lane.b32.xlu2 %v2154_v7, %s2181_s28 }
0x2d10   :  { %v1571_v8 = vpop.permute.xlu2 %1570 }
0x2d11   :  { %v1573_v10 = vmul.f32 %v1571_v8, %v1554_v63  ;;  %v1814_v8 = vld [vmem:[%s2915_s17 + $0x18] sm:$0xff] }
0x2d13   :  { %1575 = vrot.lane.b32.xlu1 %v1573_v10, %s2182_s4  ;;  %v1813_v10 = vld [vmem:[%s2915_s17 + $0x10] sm:$0xff] }
0x2d85   :  { %v1576_v12 = vpop.permute.xlu1 %1575 }
0x2d86   :  { %1979 = vmatmul.msk.f32.vlgmr.msrb.gmra.mxu0 %vm160_vm5, %v1576_v12 }
0x2d87   :  { %1839 = vmatpush.msrb.mxu0 %v1814_v8 }
0x2d89   :  { %1840 = vmatpush.msrb.mxu0 %v1813_v10 }
0x2e03   :  { %v1596_v9 = vpop.f32.mrf.mxu0 }
0x2e04   :  { %v1597_v13 = vadd.f32 %v2505_v41, %v1596_v9  ;;  %v1897_v41 = vld [vmem:[%s2914_s19] sm:$0xff] }
0x2e05   :  { %1914 = vmatpush.msra.mxu2 %v1897_v41  ;;  %v1811_v9 = vld [vmem:[%s2915_s17] sm:$0xff] }
0x2e06   :  { %2155 = vtanh.f32 %v1597_v13  ;;  %v1791_v13 = vpop.f32.mrf.mxu3 }
0x2e0c   :  { %v2156_v14 = vpop.eup %2155 }
0x2e0d   :  { %1980 = vmatmul.msk.f32.vlgmr.msra.gmra.mxu1 %vm160_vm5, %v2156_v14  ;;  %v2836_v14 = vld [vmem:[%s2913_s15] ss:$0 sm:$0xff] }
0x2e0e   :  { %v1794_v18 = vpop.f32.mrf.mxu3 }
0x2e8a   :  { %v1620_v15 = vpop.f32.mrf.mxu1 }
0x2e8b   :  { %v1621_v16 = vadd.f32 %v2572_v55, %v1620_v15 }
0x2e8d   :  { %2157 = vtanh.f32 %v1621_v16  ;;  %v1792_v16 = vadd.f32 %v2836_v14, %v1791_v13 }
0x2e8f   :  { %v1803_v41 = vmax.f32 %v1792_v16, 0.0 }
0x2e93   :  { %v2793_v17 = vpop.eup %2157 }
0x2e94   :  { %1626 = vrot.lane.b32.xlu0 %v2793_v17, %s2182_s4 }
0x2f06   :  { %v1627_v19 = vpop.permute.xlu0 %1626 }
0x2f07   :  { %v1629_v20 = vsel %vm160_vm5, %v1576_v12, %v1627_v19  ;;  %v1812_v12 = vld [vmem:[%s2915_s17 + $0x8] sm:$0xff]  ;;  %v1795_v19 = vadd.f32 %v2836_v14, %v1794_v18 }
0x2f08   :  { %1981 = vmatmul.msk.f32.vlgmr.msrb.gmra.mxu2 %vm927_vm13, %v1629_v20  ;;  %1841 = vmatpush.msrb.mxu0 %v1812_v12 }
0x2f09   :  { %v1804_v20 = vmax.f32 %v1795_v19, 0.0 }
0x2f0a   :  { %1842 = vmatpush.msrb.mxu0 %v1811_v9 }
0x2f10   :  { %1997 = vmatmul.msk.f32.vlgmr.msra.gmra.mxu2 %vm701_vm8, %v2412_v5  ;;  %v762_v5 = vadd.f32 %v761_v57, %v760_v45 }
0x2f8b   :  { %v1650_v55 = vpop.f32.mrf.mxu2 }
0x2f8c   :  { %v1653_v21 = vadd.f32 %v1650_v55, %v2598_v62  ;;  %v1797_v55 = vpop.f32.mrf.mxu3 }
0x2f8e   :  { %2159 = vtanh.f32 %v1653_v21  ;;  %v1982_v23 = vmul.f32 -1.442695, %v1653_v21  ;;  %v1798_v21 = vadd.f32 %v2836_v14, %v1797_v55 }
0x2f90   :  { %2161 = vpow2.f32 %v1982_v23  ;;  %v1810_v23 = vld [vmem:[%s2916_s16 + $0x18] sm:$0xff] }
0x2f91   :  { %1868 = vmatpush.msra.mxu1 %v1810_v23 }
0x2f94   :  { %v2160_v22 = vpop.eup %2159 }
0x2f95   :  { %1676 = vrot.lane.b32.xlu2 %v2160_v22, %s2181_s28  ;;  %v1805_v22 = vmax.f32 %v1798_v21, 0.0 }
0x2f96   :  { %v2162_v25 = vpop.eup %2161 }
0x2f97   :  { %v1657_v26 = vadd.f32 1.0, %v2162_v25  ;;  %v1809_v25 = vld [vmem:[%s2916_s16 + $0x10] sm:$0xff] }
0x2f98   :  { %1869 = vmatpush.msra.mxu1 %v1809_v25 }
0x2f99   :  { %2163 = vrcp.f32 %v1657_v26  ;;  %v1669_v32 = vand.u32 2147483648, %v1657_v26  ;;  %vm1663_vm15 = vweird.f32 %v1657_v26  ;;  %v1667_v33 = vand.u32 2147483647, %v1657_v26 }
0x2f9a   :  { %2165 = vrcp.f32 %v2184_v34 }
0x2f9b   :  { %v1670_v37 = vor.u32 1.1754944e-38, %v1669_v32  ;;  %vm1668_vm2 = vcmp.eq.f32.partialorder %v1667_v33, 8.507059e+37  ;;  %v2185_v32 = vmov 32.0  }
0x2f9f   :  { %v2164_v27 = vpop.eup %2163 }
0x2fa0   :  { %v1659_v28 = vmul.f32 %v2164_v27, %v1657_v26  ;;  %vm1664_vm13 = vweird.f32 %v2164_v27  ;;  %v2166_v53 = vpop.eup %2165  ;;  %v1808_v26 = vld [vmem:[%s2916_s16 + $0x8] sm:$0xff] }
0x2fa1   :  { %vm1665_vm1 = vmor %vm1663_vm15, %vm1664_vm13  ;;  %v749_v43 = vmul.f32 4.0, %v2166_v53  ;;  %vm753_vm6 = vweird.f32 %v2166_v53  ;;  %1870 = vmatpush.msra.mxu1 %v1808_v26 }
0x2fa2   :  { %v1660_v29 = vsub.f32 1.0, %v1659_v28 }
0x2fa3   :  { %v750_v6 = vsub.f32 1.0, %v749_v43 }
0x2fa4   :  { %v1661_v30 = vmul.f32 %v2164_v27, %v1660_v29  ;;  %v2179_v29 = vld [vmem:[%s2907_s11] ss:$0 sm:$0xff] }
0x2fa5   :  { %v751_v56 = vmul.f32 %v2166_v53, %v750_v6 }
0x2fa6   :  { %v1662_v31 = vadd.f32 %v2164_v27, %v1661_v30 }
0x2fa7   :  { %v752_v59 = vadd.f32 %v2166_v53, %v751_v56  ;;  %v2010_v56 = vld [vmem:[%s2917_s18] ss:$0 sm:$0xff] }
0x2fa8   :  { %v1666_v62 = vsel %vm1665_vm1, %v2164_v27, %v1662_v31  ;;  %v1807_v27 = vld [vmem:[%s2916_s16] sm:$0xff] }
0x2fa9   :  { %v1671_v39 = vsel %vm1668_vm2, %v1670_v37, %v1666_v62  ;;  %v2816_v60 = vsel %vm753_vm6, %v2166_v53, %v752_v59  ;;  %1871 = vmatpush.msra.mxu1 %v1807_v27  ;;  %v2180_v53 = vld [vmem:[%s2909_s13] ss:$0 sm:$0xff] }
0x2faa   :  { %v1674_v52 = vmul.f32 %v1671_v39, %v2784_v4  ;;  %v763_v61 = vmul.f32 %v762_v5, %v2816_v60 }
0x2fac   :  { %v764_v2 = vadd.f32 1e-10, %v763_v61 }
0x2fef   :  { %v1677_v38 = vpop.permute.xlu2 %1676 }
0x2ff0   :  { %v1679_v40 = vmul.f32 %v1677_v38, %v1671_v39 }
0x2ff2   :  { %1681 = vrot.lane.b32.xlu1 %v1679_v40, %s2182_s4 }
0x301c   :  { %730 = vadd.xlane.f32.xlu1 %v729_v50 }
0x3064   :  { %v1682_v11 = vpop.permute.xlu1 %1681 }
0x3065   :  { %v1684_v24 = vadd.f32 %v1682_v11, %v1674_v52 }
0x3067   :  { %2167 = vtanh.f32 %v1684_v24 }
0x3068   :  { %2169 = vlog2.f32 %v764_v2  ;;  %v1916_v2 = vpop.f32.mrf.mxu2 }
0x306d   :  { %v2168_v44 = vpop.eup %2167 }
0x306e   :  { %1687 = vrot.lane.b32.xlu0 %v2168_v44, %s2181_s28  ;;  %v2170_v63 = vpop.eup %2169 }
0x306f   :  { %v766_v0 = vmul.f32 0.6931472, %v2170_v63 }
0x3071   :  { %v767_v1 = vmul.f32 %v766_v0, %v763_v61 }
0x3073   :  { %v768_v3 = vsel %vm701_vm8, %v767_v1, 0.0  ;;  %vm1894_vm8 = vcmp.eq.s32.totalorder %v2395_v49, 25 }
0x308f   :  { %v731_v46 = vpop.xlane.xlu1 %730 }
0x3098   :  { %769 = vadd.xlane.f32.xlu0 %v768_v3 }
0x30e0   :  { %v1688_v4 = vpop.permute.xlu0 %1687 }
0x30e1   :  { %v1690_v7 = vmul.f32 %v1688_v4, %v1671_v39 }
0x30e3   :  { %1692 = vrot.lane.b32.xlu2 %v1690_v7, %s2182_s4 }
0x310b   :  { %v770_v34 = vpop.xlane.xlu0 %769 }
0x313d   :  { %v1693_v15 = vpop.permute.xlu2 %1692 }
0x313e   :  { %1983 = vmatmul.msk.f32.vlgmr.msra.gmra.mxu0 %vm160_vm5, %v1693_v15 }
0x3146   :  { %1989 = vmatmul.msk.f32.vlgmr.msrb.gmra.mxu0 %vm160_vm5, %v1803_v41 }
0x314e   :  { %1990 = vmatmul.msk.f32.gmra.mxu0 %vm160_vm5, %v1804_v20 }
0x3156   :  { %1991 = vmatmul.msk.f32.gmra.mxu0 %vm160_vm5, %v1805_v22 }
0x31bb   :  { %v1713_v28 = vpop.f32.mrf.mxu0 }
0x31bc   :  { %v1714_v30 = vadd.f32 %v2179_v29, %v1713_v28 }
0x31be   :  { %2171 = vtanh.f32 %v1714_v30 }
0x31bf   :  { %2173 = vrcp.f32 %v2185_v32 }
0x31c3   :  { %v1844_v42 = vpop.f32.mrf.mxu0 }
0x31c4   :  { %v2172_v31 = vpop.eup %2171 }
0x31c5   :  { %1984 = vmatmul.msk.f32.vlgmr.msrb.gmra.mxu1 %vm160_vm5, %v2172_v31  ;;  %v2174_v33 = vpop.eup %2173 }
0x31c6   :  { %v733_v62 = vmul.f32 32.0, %v2174_v33  ;;  %vm737_vm4 = vweird.f32 %v2174_v33 }
0x31c8   :  { %v734_v37 = vsub.f32 1.0, %v733_v62 }
0x31ca   :  { %v735_v38 = vmul.f32 %v2174_v33, %v734_v37 }
0x31cc   :  { %v736_v39 = vadd.f32 %v2174_v33, %v735_v38 }
0x31cd   :  { %1993 = vmatmul.msk.f32.vlgmr.msra.gmra.mxu1 %vm160_vm5, %v2763_v48 }
0x31ce   :  { %v738_v40 = vsel %vm737_vm4, %v2174_v33, %v736_v39 }
0x31cf   :  { %v739_v47 = vmul.f32 %v738_v40, %v731_v46 }
0x31d1   :  { %v741_v50 = vsel %vm740_vm10, %v739_v47, 0.0 }
0x31d2   :  { %v742_v48 = vrot.slane %v741_v50, 4 }
0x31d4   :  { %v743_v58 = vadd.f32 %v742_v48, %v741_v50 }
0x31d5   :  { %1994 = vmatmul.msk.f32.gmra.mxu1 %vm160_vm5, %v2770_v51  ;;  %v771_v51 = vsub.f32 0.0, %v770_v34 }
0x31d6   :  { %v744_v52 = vrot.slane %v743_v58, 2 }
0x31d7   :  { %v772_v11 = vmul.f32 1.442695, %v771_v51 }
0x31d9   :  { %2175 = vpow2.f32 %v772_v11 }
0x31dd   :  { %1995 = vmatmul.msk.f32.gmra.mxu1 %vm160_vm5, %v2776_v35  ;;  %v745_v35 = vadd.f32 %v744_v52, %v743_v58 }
0x31df   :  { %v746_v24 = vrot.slane %v745_v35, 1  ;;  %v2176_v43 = vpop.eup %2175 }
0x31e0   :  { %v1895_v6 = vsel %vm1894_vm8, %v2176_v43, 0.0 }
0x31e1   :  { %v747_v44 = vadd.f32 %v746_v24, %v745_v35 }
0x31e3   :  { %v755_v45 = vmul.f32 %v2816_v60, %v747_v44  ;;  %v1847_v60 = vpop.f32.mrf.mxu0 }
0x31e5   :  { %v1896_v59 = vsel %vm1893_vm7, %v755_v45, %v1895_v6 }
0x31e6   :  { %v1917_v1 = vadd.f32 %v1916_v2, %v1896_v59 }
0x3242   :  { %v1737_v36 = vpop.f32.mrf.mxu1 }
0x3243   :  { %v1738_v54 = vadd.f32 %v2180_v53, %v1737_v36 }
0x3245   :  { %2177 = vtanh.f32 %v1738_v54 }
0x324a   :  { %v1873_v57 = vpop.f32.mrf.mxu1 }
0x324b   :  { %v2178_v5 = vpop.eup %2177  ;;  %v1874_v61 = vadd.f32 %v1873_v57, %v1844_v42 }
0x324c   :  { %v1748_v63 = vrot.slane %v2178_v5, 4 }
0x324d   :  { %v1889_v0 = vadd.f32 %v2010_v56, %v1874_v61 }
0x324e   :  { %v1753_v3 = vsel %vm740_vm10, %v2793_v17, %v1748_v63  ;;  %v1850_v17 = vpop.f32.mrf.mxu0 }
0x324f   :  { %1919 = vst [vmem:[%s2918_s20] sm:$0xff] %v1889_v0  ;;  %v1923_v49 = vadd.f32 %v1917_v1, %v1889_v0  ;;  %1988 = vmatmul.msk.f32.gmra.mxu3 %vm160_vm5, %v1753_v3  ;;  %1996 = vmatmul.msk.f32.gmra.mxu1 %vm160_vm5, %v1753_v3 }
0x3251   :  { %1924 = vst [vmem:[%s2918_s20] sm:$0xf] %v1923_v49 }
0x3252   :  { %v1876_v4 = vpop.f32.mrf.mxu1 }
0x3253   :  { %v1877_v7 = vadd.f32 %v1876_v4, %v1847_v60 }
0x3255   :  { %v1890_v8 = vadd.f32 %v2010_v56, %v1877_v7 }
0x3257   :  { %1920 = vst [vmem:[%s2918_s20 + $0x8] sm:$0xff] %v1890_v8 }
0x325a   :  { %v1879_v10 = vpop.f32.mrf.mxu1 }
0x325b   :  { %v1880_v12 = vadd.f32 %v1879_v10, %v1850_v17 }
0x325d   :  { %v1891_v9 = vadd.f32 %v2010_v56, %v1880_v12 }
0x325f   :  { %1921 = vst [vmem:[%s2918_s20 + $0x10] sm:$0xff] %v1891_v9 }
0x32cc   :  { %v1882_v18 = vpop.f32.mrf.mxu1 }
0x32d2   :  { %v1800_v13 = vpop.f32.mrf.mxu3 }
0x32d3   :  { %v1801_v15 = vadd.f32 %v2836_v14, %v1800_v13 }
0x32d5   :  { %v1806_v16 = vmax.f32 %v1801_v15, 0.0 }
0x32d7   :  { %1992 = vmatmul.msk.f32.gmra.mxu0 %vm160_vm5, %v1806_v16 }
0x3354   :  { %v1853_v41 = vpop.f32.mrf.mxu0 }
0x3355   :  { %v1883_v19 = vadd.f32 %v1882_v18, %v1853_v41 }
0x3357   :  { %v1892_v20 = vadd.f32 %v2010_v56, %v1883_v19 }
0x3359   :  { %1922 = vst [vmem:[%s2918_s20 + $0x18] sm:$0xff] %v1892_v20 }

</bundles_post_ra>
